<compile_context>
chip_gen: v7x
topology: tpu7x:2x2x1
jax: 0.10.0
libtpu: 0.0.40
codegen_flags: <defaults>
</compile_context>

<pallas_src>
import functools

import numpy as np
import jax
import jax.numpy as jnp
from jax import lax
from jax.experimental import pallas as pl
from jax.experimental.pallas import tpu as pltpu


# ----------------------------------------------------------------------------
# Positional encoding table (same formula as get_positional_encoding_table)
# ----------------------------------------------------------------------------
def positional_encoding_table(max_seq_len: int, hidden_dim: int) -> np.ndarray:
    def get_angle(position, i):
        return position / np.power(10000, 2 * (i // 2) / hidden_dim)

    table = np.array(
        [[get_angle(pos, i) for i in range(hidden_dim)] for pos in range(max_seq_len)],
        dtype=np.float32,
    )
    table[:, 0::2] = np.sin(table[:, 0::2])
    table[:, 1::2] = np.cos(table[:, 1::2])
    return table


# ----------------------------------------------------------------------------
# Fused encoder-layer Pallas kernel; one (batch, query-tile) per grid step
# ----------------------------------------------------------------------------
def encoder_layer_kernel(
    xq_ref, xf_ref, mask_ref,
    wq_ref, bq_ref, wk_ref, bk_ref, wv_ref, bv_ref, wo_ref, bo_ref,
    g1_ref, be1_ref,
    w1_ref, b1_ref, w2_ref, b2_ref,
    g2_ref, be2_ref,
    o_ref,
    *, n_heads: int, head_dim: int, eps: float,
):
    f32 = jnp.float32
    bf16 = jnp.bfloat16

    x_q = xq_ref[0]          # (TQ, H) f32  query-tile rows (residual stream)
    x_f = xf_ref[0]          # (S,  H) f32  full sequence (for K/V)
    add_mask = mask_ref[0]   # (1,  S) f32  additive mask: -1e9 at PAD keys

    xq_bf = x_q.astype(bf16)
    xf_bf = x_f.astype(bf16)

    TQ, H = x_q.shape
    inv_scale = f32(1.0 / (head_dim ** 0.5))

    # --- Q, K, V projections (bf16 MXU, f32 accumulation); scale folded into Q ---
    q = (jnp.dot(xq_bf, wq_ref[...], preferred_element_type=f32) + bq_ref[...]) * inv_scale
    k = jnp.dot(xf_bf, wk_ref[...], preferred_element_type=f32) + bk_ref[...]
    v = jnp.dot(xf_bf, wv_ref[...], preferred_element_type=f32) + bv_ref[...]

    q_bf = q.astype(bf16)
    k_bf = k.astype(bf16)
    v_bf = v.astype(bf16)

    # --- per-head attention with output projection folded into the loop ---
    #   attn = sum_h softmax(q_h k_h^T + mask) v_h @ Wo[h*hd:(h+1)*hd, :]
    nt_dims = (((1,), (1,)), ((), ()))   # contract last dims (no materialized k.T)
    attn = jnp.zeros((TQ, H), f32)
    for h in range(n_heads):             # static unroll over heads
        lo = h * head_dim
        qh = q_bf[:, lo:lo + head_dim]   # (TQ, hd)
        kh = k_bf[:, lo:lo + head_dim]   # (S,  hd)
        vh = v_bf[:, lo:lo + head_dim]   # (S,  hd)

        s = lax.dot_general(qh, kh, nt_dims, preferred_element_type=f32)  # (TQ, S)
        s = s + add_mask
        s = s - jnp.max(s, axis=-1, keepdims=True)
        p = jnp.exp(s)
        p = p * pl.reciprocal(jnp.sum(p, axis=-1, keepdims=True), approx=True)

        ctx_h = jnp.dot(p.astype(bf16), vh, preferred_element_type=f32)   # (TQ, hd)
        attn = attn + jnp.dot(
            ctx_h.astype(bf16), wo_ref[lo:lo + head_dim, :],
            preferred_element_type=f32,
        )

    # --- output bias + residual + LayerNorm1 (f32) ---
    y = attn + bo_ref[...] + x_q
    mu = jnp.mean(y, axis=-1, keepdims=True)
    var = jnp.mean((y - mu) ** 2, axis=-1, keepdims=True)
    y1 = (y - mu) * lax.rsqrt(var + eps) * g1_ref[...] + be1_ref[...]

    # --- position-wise feed forward + residual + LayerNorm2 ---
    h1 = jnp.maximum(
        jnp.dot(y1.astype(bf16), w1_ref[...], preferred_element_type=f32) + b1_ref[...],
        0.0,
    )
    h2 = jnp.dot(h1.astype(bf16), w2_ref[...], preferred_element_type=f32) + b2_ref[...]
    z = h2 + y1
    mu2 = jnp.mean(z, axis=-1, keepdims=True)
    var2 = jnp.mean((z - mu2) ** 2, axis=-1, keepdims=True)
    o_ref[0] = ((z - mu2) * lax.rsqrt(var2 + eps) * g2_ref[...] + be2_ref[...]).astype(o_ref.dtype)


def _pick_seq_tile(seq_len: int) -> int:
    """Largest query tile <= 256 that divides S (multiple of 8), else full S."""
    for t in (256, 128, 64, 32, 16, 8):
        if seq_len % t == 0:
            return t
    return seq_len


def encoder_layer(x, add_mask, params, *, n_heads: int, eps: float = 1e-12):
    """x: (B, S, H) f32; add_mask: (B, 1, S) f32. Returns (B, S, H) f32."""
    B, S, H = x.shape
    assert H % n_heads == 0, "hidden_dim must be divisible by n_heads"
    head_dim = H // n_heads
    F = params["w1"].shape[1]
    TQ = _pick_seq_tile(S)

    kernel = functools.partial(
        encoder_layer_kernel, n_heads=n_heads, head_dim=head_dim, eps=eps
    )

    def wspec(shape):
        return pl.BlockSpec(shape, lambda b, qt: (0,) * len(shape))

    in_specs = [
        pl.BlockSpec((1, TQ, H), lambda b, qt: (b, qt, 0)),   # x, query tile
        pl.BlockSpec((1, S, H), lambda b, qt: (b, 0, 0)),     # x, full seq (K/V)
        pl.BlockSpec((1, 1, S), lambda b, qt: (b, 0, 0)),     # additive mask row
        wspec((H, H)), wspec((1, H)),                         # Wq, bq
        wspec((H, H)), wspec((1, H)),                         # Wk, bk
        wspec((H, H)), wspec((1, H)),                         # Wv, bv
        wspec((H, H)), wspec((1, H)),                         # Wo, bo
        wspec((1, H)), wspec((1, H)),                         # gamma1, beta1
        wspec((H, F)), wspec((1, F)),                         # W1, b1
        wspec((F, H)), wspec((1, H)),                         # W2, b2
        wspec((1, H)), wspec((1, H)),                         # gamma2, beta2
    ]

    return pl.pallas_call(
        kernel,
        grid=(B, S // TQ),
        in_specs=in_specs,
        out_specs=pl.BlockSpec((1, TQ, H), lambda b, qt: (b, qt, 0)),
        out_shape=jax.ShapeDtypeStruct((B, S, H), jnp.float32),
        compiler_params=pltpu.CompilerParams(
            dimension_semantics=("parallel", "parallel"),
            vmem_limit_bytes=64 * 1024 * 1024,
        ),
    )(
        x, x, add_mask,
        params["wq"], params["bq"], params["wk"], params["bk"],
        params["wv"], params["bv"], params["wo"], params["bo"],
        params["g1"], params["be1"],
        params["w1"], params["b1"], params["w2"], params["b2"],
        params["g2"], params["be2"],
    )


# ----------------------------------------------------------------------------
# Full BERT forward
# ----------------------------------------------------------------------------
def bert_forward(token_ids, segment_ids, params, *, n_heads: int, padding_id: int):
    # additive key-padding mask, (B, 1, S): -1e9 where key token is PAD
    pad = token_ids == padding_id
    add_mask = jnp.where(pad, jnp.float32(-1e9), jnp.float32(0.0))[:, None, :]

    # embeddings (gathers stay in plain JAX; pos table indexed by token ids,
    # exactly as in the reference module)
    emb = (
        params["tok_emb"][token_ids]
        + params["seg_emb"][segment_ids]
        + params["pos_emb"][token_ids]
    ).astype(jnp.float32)

    out = emb
    for layer_params in params["layers"]:
        out = encoder_layer(out, add_mask, layer_params, n_heads=n_heads)
    return out


# ----------------------------------------------------------------------------
# Deterministic parameter initialization (weights stored in bf16)
# ----------------------------------------------------------------------------
def init_params(key, *, vocab_size, hidden_dim, n_heads, ff_dim, n_layers, max_seq_len):
    def norm(k, shape, scale=0.02):
        return (scale * jax.random.normal(k, shape, dtype=jnp.float32)).astype(jnp.bfloat16)

    keys = jax.random.split(key, 2 + n_layers)
    params = {
        "tok_emb": (0.02 * jax.random.normal(keys[0], (vocab_size, hidden_dim))).astype(jnp.float32),
        "seg_emb": (0.02 * jax.random.normal(keys[1], (2, hidden_dim))).astype(jnp.float32),
        "pos_emb": jnp.asarray(positional_encoding_table(max_seq_len, hidden_dim)),
        "layers": [],
    }
    for li in range(n_layers):
        lk = jax.random.split(keys[2 + li], 8)
        layer = {
            "wq": norm(lk[0], (hidden_dim, hidden_dim)),
            "bq": jnp.zeros((1, hidden_dim), jnp.float32),
            "wk": norm(lk[1], (hidden_dim, hidden_dim)),
            "bk": jnp.zeros((1, hidden_dim), jnp.float32),
            "wv": norm(lk[2], (hidden_dim, hidden_dim)),
            "bv": jnp.zeros((1, hidden_dim), jnp.float32),
            "wo": norm(lk[3], (hidden_dim, hidden_dim)),
            "bo": jnp.zeros((1, hidden_dim), jnp.float32),
            "g1": jnp.ones((1, hidden_dim), jnp.float32),
            "be1": jnp.zeros((1, hidden_dim), jnp.float32),
            "w1": norm(lk[4], (hidden_dim, ff_dim)),
            "b1": jnp.zeros((1, ff_dim), jnp.float32),
            "w2": norm(lk[5], (ff_dim, hidden_dim)),
            "b2": jnp.zeros((1, hidden_dim), jnp.float32),
            "g2": jnp.ones((1, hidden_dim), jnp.float32),
            "be2": jnp.zeros((1, hidden_dim), jnp.float32),
        }
        params["layers"].append(layer)
    return params


if __name__ == "__main__":
    # Small, forward-consistent shapes
    VOCAB = 16
    HIDDEN = 32
    N_HEADS = 4
    FF_DIM = 64
    N_LAYERS = 2
    MAX_SEQ = 16   # >= VOCAB because pos table is indexed by token ids (ref behavior)
    SEQ = 8
    BATCH = 2
    PADDING_ID = 0

    # TODO(synk): dropout (rate 0.3 in the reference) is omitted — inference/eval semantics.

    root = jax.random.PRNGKey(0)
    k_param, k_tok, k_seg = jax.random.split(root, 3)

    params = init_params(
        k_param,
        vocab_size=VOCAB, hidden_dim=HIDDEN, n_heads=N_HEADS,
        ff_dim=FF_DIM, n_layers=N_LAYERS, max_seq_len=MAX_SEQ,
    )

    token_ids = jax.random.randint(k_tok, (BATCH, SEQ), 1, VOCAB, dtype=jnp.int32)
    # introduce some PAD tokens to exercise the attention mask
    token_ids = token_ids.at[:, -2:].set(PADDING_ID)
    segment_ids = jax.random.randint(k_seg, (BATCH, SEQ), 0, 2).astype(jnp.int32)

    out = bert_forward(
        token_ids, segment_ids, params, n_heads=N_HEADS, padding_id=PADDING_ID
    )
    out = jax.block_until_ready(out)

    assert out.shape == (BATCH, SEQ, HIDDEN)
    assert bool(jnp.all(jnp.isfinite(out)))
    print("KERNEL_OK")
</pallas_src>

<mosaic_0001>
module attributes {stable_mosaic.version = 11 : i64} {
  func.func @encoder_layer_kernel(%arg0: i32, %arg1: i32, %arg2: memref<1x8x32xf32, #tpu.memory_space<vmem>>, %arg3: memref<1x8x32xf32, #tpu.memory_space<vmem>>, %arg4: memref<1x1x8xf32, #tpu.memory_space<vmem>>, %arg5: memref<32x32xbf16, #tpu.memory_space<vmem>>, %arg6: memref<1x32xf32, #tpu.memory_space<vmem>>, %arg7: memref<32x32xbf16, #tpu.memory_space<vmem>>, %arg8: memref<1x32xf32, #tpu.memory_space<vmem>>, %arg9: memref<32x32xbf16, #tpu.memory_space<vmem>>, %arg10: memref<1x32xf32, #tpu.memory_space<vmem>>, %arg11: memref<32x32xbf16, #tpu.memory_space<vmem>>, %arg12: memref<1x32xf32, #tpu.memory_space<vmem>>, %arg13: memref<1x32xf32, #tpu.memory_space<vmem>>, %arg14: memref<1x32xf32, #tpu.memory_space<vmem>>, %arg15: memref<32x64xbf16, #tpu.memory_space<vmem>>, %arg16: memref<1x64xf32, #tpu.memory_space<vmem>>, %arg17: memref<64x32xbf16, #tpu.memory_space<vmem>>, %arg18: memref<1x32xf32, #tpu.memory_space<vmem>>, %arg19: memref<1x32xf32, #tpu.memory_space<vmem>>, %arg20: memref<1x32xf32, #tpu.memory_space<vmem>>, %arg21: memref<1x8x32xf32, #tpu.memory_space<vmem>>) attributes {dimension_semantics = [#tpu.dimension_semantics<parallel>, #tpu.dimension_semantics<parallel>], iteration_bounds = array<i64: 2, 1>, scalar_prefetch = 0 : i64, scratch_operands = 0 : i64, tpu.core_type = #tpu.core_type<tc>, window_params = [{transform_indices = @transform_0, window_bounds = array<i64: 1, 8, 32>}, {transform_indices = @transform_1, window_bounds = array<i64: 1, 8, 32>}, {transform_indices = @transform_2, window_bounds = array<i64: 1, 1, 8>}, {pipeline_mode = #tpu.pipeline_mode<synchronous>, transform_indices = @transform_3, window_bounds = array<i64: 32, 32>}, {pipeline_mode = #tpu.pipeline_mode<synchronous>, transform_indices = @transform_4, window_bounds = array<i64: 1, 32>}, {pipeline_mode = #tpu.pipeline_mode<synchronous>, transform_indices = @transform_5, window_bounds = array<i64: 32, 32>}, {pipeline_mode = #tpu.pipeline_mode<synchronous>, transform_indices = @transform_6, window_bounds = array<i64: 1, 32>}, {pipeline_mode = #tpu.pipeline_mode<synchronous>, transform_indices = @transform_7, window_bounds = array<i64: 32, 32>}, {pipeline_mode = #tpu.pipeline_mode<synchronous>, transform_indices = @transform_8, window_bounds = array<i64: 1, 32>}, {pipeline_mode = #tpu.pipeline_mode<synchronous>, transform_indices = @transform_9, window_bounds = array<i64: 32, 32>}, {pipeline_mode = #tpu.pipeline_mode<synchronous>, transform_indices = @transform_10, window_bounds = array<i64: 1, 32>}, {pipeline_mode = #tpu.pipeline_mode<synchronous>, transform_indices = @transform_11, window_bounds = array<i64: 1, 32>}, {pipeline_mode = #tpu.pipeline_mode<synchronous>, transform_indices = @transform_12, window_bounds = array<i64: 1, 32>}, {pipeline_mode = #tpu.pipeline_mode<synchronous>, transform_indices = @transform_13, window_bounds = array<i64: 32, 64>}, {pipeline_mode = #tpu.pipeline_mode<synchronous>, transform_indices = @transform_14, window_bounds = array<i64: 1, 64>}, {pipeline_mode = #tpu.pipeline_mode<synchronous>, transform_indices = @transform_15, window_bounds = array<i64: 64, 32>}, {pipeline_mode = #tpu.pipeline_mode<synchronous>, transform_indices = @transform_16, window_bounds = array<i64: 1, 32>}, {pipeline_mode = #tpu.pipeline_mode<synchronous>, transform_indices = @transform_17, window_bounds = array<i64: 1, 32>}, {pipeline_mode = #tpu.pipeline_mode<synchronous>, transform_indices = @transform_18, window_bounds = array<i64: 1, 32>}, {transform_indices = @transform_19, window_bounds = array<i64: 1, 8, 32>}]} {
    %c0 = arith.constant 0 : index
    %c0_0 = arith.constant 0 : index
    %c0_1 = arith.constant 0 : index
    %0 = vector.load %arg2[%c0, %c0_0, %c0_1] : memref<1x8x32xf32, #tpu.memory_space<vmem>>, vector<1x8x32xf32>
    %1 = vector.shape_cast %0 : vector<1x8x32xf32> to vector<8x32xf32>
    %c0_2 = arith.constant 0 : index
    %c0_3 = arith.constant 0 : index
    %c0_4 = arith.constant 0 : index
    %2 = vector.load %arg3[%c0_2, %c0_3, %c0_4] : memref<1x8x32xf32, #tpu.memory_space<vmem>>, vector<1x8x32xf32>
    %3 = vector.shape_cast %2 : vector<1x8x32xf32> to vector<8x32xf32>
    %c0_5 = arith.constant 0 : index
    %c0_6 = arith.constant 0 : index
    %c0_7 = arith.constant 0 : index
    %4 = vector.load %arg4[%c0_5, %c0_6, %c0_7] : memref<1x1x8xf32, #tpu.memory_space<vmem>>, vector<1x1x8xf32>
    %5 = vector.shape_cast %4 : vector<1x1x8xf32> to vector<1x8xf32>
    %6 = arith.truncf %1 : vector<8x32xf32> to vector<8x32xbf16>
    %7 = arith.truncf %3 : vector<8x32xf32> to vector<8x32xbf16>
    %c0_8 = arith.constant 0 : index
    %c0_9 = arith.constant 0 : index
    %8 = vector.load %arg5[%c0_8, %c0_9] : memref<32x32xbf16, #tpu.memory_space<vmem>>, vector<32x32xbf16>
    %cst = arith.constant dense<0.000000e+00> : vector<8x32xf32>
    %9 = tpu.matmul %6, %8, %cst {dimension_numbers = #tpu.dot_dimension_numbers<[1], [0], [0], [1], [0, 0, 1, 1], [], []>} : vector<8x32xbf16>, vector<32x32xbf16>, vector<8x32xf32> -> vector<8x32xf32>
    %c0_10 = arith.constant 0 : index
    %c0_11 = arith.constant 0 : index
    %10 = vector.load %arg6[%c0_10, %c0_11] : memref<1x32xf32, #tpu.memory_space<vmem>>, vector<1x32xf32>
    %11 = vector.broadcast %10 : vector<1x32xf32> to vector<8x32xf32>
    %12 = arith.addf %9, %11 : vector<8x32xf32>
    %cst_12 = arith.constant 0.353553385 : f32
    %13 = vector.broadcast %cst_12 : f32 to vector<8x32xf32>
    %14 = arith.mulf %12, %13 : vector<8x32xf32>
    %c0_13 = arith.constant 0 : index
    %c0_14 = arith.constant 0 : index
    %15 = vector.load %arg7[%c0_13, %c0_14] : memref<32x32xbf16, #tpu.memory_space<vmem>>, vector<32x32xbf16>
    %cst_15 = arith.constant dense<0.000000e+00> : vector<8x32xf32>
    %16 = tpu.matmul %7, %15, %cst_15 {dimension_numbers = #tpu.dot_dimension_numbers<[1], [0], [0], [1], [0, 0, 1, 1], [], []>} : vector<8x32xbf16>, vector<32x32xbf16>, vector<8x32xf32> -> vector<8x32xf32>
    %c0_16 = arith.constant 0 : index
    %c0_17 = arith.constant 0 : index
    %17 = vector.load %arg8[%c0_16, %c0_17] : memref<1x32xf32, #tpu.memory_space<vmem>>, vector<1x32xf32>
    %18 = vector.broadcast %17 : vector<1x32xf32> to vector<8x32xf32>
    %19 = arith.addf %16, %18 : vector<8x32xf32>
    %c0_18 = arith.constant 0 : index
    %c0_19 = arith.constant 0 : index
    %20 = vector.load %arg9[%c0_18, %c0_19] : memref<32x32xbf16, #tpu.memory_space<vmem>>, vector<32x32xbf16>
    %cst_20 = arith.constant dense<0.000000e+00> : vector<8x32xf32>
    %21 = tpu.matmul %7, %20, %cst_20 {dimension_numbers = #tpu.dot_dimension_numbers<[1], [0], [0], [1], [0, 0, 1, 1], [], []>} : vector<8x32xbf16>, vector<32x32xbf16>, vector<8x32xf32> -> vector<8x32xf32>
    %c0_21 = arith.constant 0 : index
    %c0_22 = arith.constant 0 : index
    %22 = vector.load %arg10[%c0_21, %c0_22] : memref<1x32xf32, #tpu.memory_space<vmem>>, vector<1x32xf32>
    %23 = vector.broadcast %22 : vector<1x32xf32> to vector<8x32xf32>
    %24 = arith.addf %21, %23 : vector<8x32xf32>
    %25 = arith.truncf %14 : vector<8x32xf32> to vector<8x32xbf16>
    %26 = arith.truncf %19 : vector<8x32xf32> to vector<8x32xbf16>
    %27 = arith.truncf %24 : vector<8x32xf32> to vector<8x32xbf16>
    %cst_23 = arith.constant 0.000000e+00 : f32
    %28 = vector.broadcast %cst_23 : f32 to vector<8x32xf32>
    %29 = vector.extract_strided_slice %25 {offsets = [0, 0], sizes = [8, 8], strides = [1, 1]} : vector<8x32xbf16> to vector<8x8xbf16>
    %30 = vector.extract_strided_slice %26 {offsets = [0, 0], sizes = [8, 8], strides = [1, 1]} : vector<8x32xbf16> to vector<8x8xbf16>
    %31 = vector.extract_strided_slice %27 {offsets = [0, 0], sizes = [8, 8], strides = [1, 1]} : vector<8x32xbf16> to vector<8x8xbf16>
    %cst_24 = arith.constant dense<0.000000e+00> : vector<8x8xf32>
    %32 = tpu.matmul %29, %30, %cst_24 {dimension_numbers = #tpu.dot_dimension_numbers<[1], [1], [0], [0], [0, 0, 1, 0], [], []>} : vector<8x8xbf16>, vector<8x8xbf16>, vector<8x8xf32> -> vector<8x8xf32>
    %33 = vector.broadcast %5 : vector<1x8xf32> to vector<8x8xf32>
    %34 = arith.addf %32, %33 : vector<8x8xf32>
    %cst_25 = arith.constant dense<0xFF800000> : vector<8xf32>
    %35 = vector.multi_reduction <maximumf>, %34, %cst_25 [1] : vector<8x8xf32> to vector<8xf32>
    %36 = vector.shape_cast %35 : vector<8xf32> to vector<8x1xf32>
    %37 = vector.broadcast %36 : vector<8x1xf32> to vector<8x8xf32>
    %38 = arith.subf %34, %37 : vector<8x8xf32>
    %39 = math.exp %38 : vector<8x8xf32>
    %cst_26 = arith.constant dense<0.000000e+00> : vector<8xf32>
    %40 = vector.multi_reduction <add>, %39, %cst_26 [1] : vector<8x8xf32> to vector<8xf32>
    %41 = vector.shape_cast %40 : vector<8xf32> to vector<8x1xf32>
    %42 = tpu.reciprocal %41 {approx = true} : vector<8x1xf32> -> vector<8x1xf32>
    %43 = vector.broadcast %42 : vector<8x1xf32> to vector<8x8xf32>
    %44 = arith.mulf %39, %43 : vector<8x8xf32>
    %45 = arith.truncf %44 : vector<8x8xf32> to vector<8x8xbf16>
    %cst_27 = arith.constant dense<0.000000e+00> : vector<8x8xf32>
    %46 = tpu.matmul %45, %31, %cst_27 {dimension_numbers = #tpu.dot_dimension_numbers<[1], [0], [0], [1], [0, 0, 1, 1], [], []>} : vector<8x8xbf16>, vector<8x8xbf16>, vector<8x8xf32> -> vector<8x8xf32>
    %47 = arith.truncf %46 : vector<8x8xf32> to vector<8x8xbf16>
    %c0_28 = arith.constant 0 : index
    %c0_29 = arith.constant 0 : index
    %48 = vector.load %arg11[%c0_28, %c0_29] : memref<32x32xbf16, #tpu.memory_space<vmem>>, vector<8x32xbf16>
    %cst_30 = arith.constant dense<0.000000e+00> : vector<8x32xf32>
    %49 = tpu.matmul %47, %48, %cst_30 {dimension_numbers = #tpu.dot_dimension_numbers<[1], [0], [0], [1], [0, 0, 1, 1], [], []>} : vector<8x8xbf16>, vector<8x32xbf16>, vector<8x32xf32> -> vector<8x32xf32>
    %50 = arith.addf %28, %49 : vector<8x32xf32>
    %51 = vector.extract_strided_slice %25 {offsets = [0, 8], sizes = [8, 8], strides = [1, 1]} : vector<8x32xbf16> to vector<8x8xbf16>
    %52 = vector.extract_strided_slice %26 {offsets = [0, 8], sizes = [8, 8], strides = [1, 1]} : vector<8x32xbf16> to vector<8x8xbf16>
    %53 = vector.extract_strided_slice %27 {offsets = [0, 8], sizes = [8, 8], strides = [1, 1]} : vector<8x32xbf16> to vector<8x8xbf16>
    %cst_31 = arith.constant dense<0.000000e+00> : vector<8x8xf32>
    %54 = tpu.matmul %51, %52, %cst_31 {dimension_numbers = #tpu.dot_dimension_numbers<[1], [1], [0], [0], [0, 0, 1, 0], [], []>} : vector<8x8xbf16>, vector<8x8xbf16>, vector<8x8xf32> -> vector<8x8xf32>
    %55 = vector.broadcast %5 : vector<1x8xf32> to vector<8x8xf32>
    %56 = arith.addf %54, %55 : vector<8x8xf32>
    %cst_32 = arith.constant dense<0xFF800000> : vector<8xf32>
    %57 = vector.multi_reduction <maximumf>, %56, %cst_32 [1] : vector<8x8xf32> to vector<8xf32>
    %58 = vector.shape_cast %57 : vector<8xf32> to vector<8x1xf32>
    %59 = vector.broadcast %58 : vector<8x1xf32> to vector<8x8xf32>
    %60 = arith.subf %56, %59 : vector<8x8xf32>
    %61 = math.exp %60 : vector<8x8xf32>
    %cst_33 = arith.constant dense<0.000000e+00> : vector<8xf32>
    %62 = vector.multi_reduction <add>, %61, %cst_33 [1] : vector<8x8xf32> to vector<8xf32>
    %63 = vector.shape_cast %62 : vector<8xf32> to vector<8x1xf32>
    %64 = tpu.reciprocal %63 {approx = true} : vector<8x1xf32> -> vector<8x1xf32>
    %65 = vector.broadcast %64 : vector<8x1xf32> to vector<8x8xf32>
    %66 = arith.mulf %61, %65 : vector<8x8xf32>
    %67 = arith.truncf %66 : vector<8x8xf32> to vector<8x8xbf16>
    %cst_34 = arith.constant dense<0.000000e+00> : vector<8x8xf32>
    %68 = tpu.matmul %67, %53, %cst_34 {dimension_numbers = #tpu.dot_dimension_numbers<[1], [0], [0], [1], [0, 0, 1, 1], [], []>} : vector<8x8xbf16>, vector<8x8xbf16>, vector<8x8xf32> -> vector<8x8xf32>
    %69 = arith.truncf %68 : vector<8x8xf32> to vector<8x8xbf16>
    %c8 = arith.constant 8 : index
    %c0_35 = arith.constant 0 : index
    %70 = vector.load %arg11[%c8, %c0_35] : memref<32x32xbf16, #tpu.memory_space<vmem>>, vector<8x32xbf16>
    %cst_36 = arith.constant dense<0.000000e+00> : vector<8x32xf32>
    %71 = tpu.matmul %69, %70, %cst_36 {dimension_numbers = #tpu.dot_dimension_numbers<[1], [0], [0], [1], [0, 0, 1, 1], [], []>} : vector<8x8xbf16>, vector<8x32xbf16>, vector<8x32xf32> -> vector<8x32xf32>
    %72 = arith.addf %50, %71 : vector<8x32xf32>
    %73 = vector.extract_strided_slice %25 {offsets = [0, 16], sizes = [8, 8], strides = [1, 1]} : vector<8x32xbf16> to vector<8x8xbf16>
    %74 = vector.extract_strided_slice %26 {offsets = [0, 16], sizes = [8, 8], strides = [1, 1]} : vector<8x32xbf16> to vector<8x8xbf16>
    %75 = vector.extract_strided_slice %27 {offsets = [0, 16], sizes = [8, 8], strides = [1, 1]} : vector<8x32xbf16> to vector<8x8xbf16>
    %cst_37 = arith.constant dense<0.000000e+00> : vector<8x8xf32>
    %76 = tpu.matmul %73, %74, %cst_37 {dimension_numbers = #tpu.dot_dimension_numbers<[1], [1], [0], [0], [0, 0, 1, 0], [], []>} : vector<8x8xbf16>, vector<8x8xbf16>, vector<8x8xf32> -> vector<8x8xf32>
    %77 = vector.broadcast %5 : vector<1x8xf32> to vector<8x8xf32>
    %78 = arith.addf %76, %77 : vector<8x8xf32>
    %cst_38 = arith.constant dense<0xFF800000> : vector<8xf32>
    %79 = vector.multi_reduction <maximumf>, %78, %cst_38 [1] : vector<8x8xf32> to vector<8xf32>
    %80 = vector.shape_cast %79 : vector<8xf32> to vector<8x1xf32>
    %81 = vector.broadcast %80 : vector<8x1xf32> to vector<8x8xf32>
    %82 = arith.subf %78, %81 : vector<8x8xf32>
    %83 = math.exp %82 : vector<8x8xf32>
    %cst_39 = arith.constant dense<0.000000e+00> : vector<8xf32>
    %84 = vector.multi_reduction <add>, %83, %cst_39 [1] : vector<8x8xf32> to vector<8xf32>
    %85 = vector.shape_cast %84 : vector<8xf32> to vector<8x1xf32>
    %86 = tpu.reciprocal %85 {approx = true} : vector<8x1xf32> -> vector<8x1xf32>
    %87 = vector.broadcast %86 : vector<8x1xf32> to vector<8x8xf32>
    %88 = arith.mulf %83, %87 : vector<8x8xf32>
    %89 = arith.truncf %88 : vector<8x8xf32> to vector<8x8xbf16>
    %cst_40 = arith.constant dense<0.000000e+00> : vector<8x8xf32>
    %90 = tpu.matmul %89, %75, %cst_40 {dimension_numbers = #tpu.dot_dimension_numbers<[1], [0], [0], [1], [0, 0, 1, 1], [], []>} : vector<8x8xbf16>, vector<8x8xbf16>, vector<8x8xf32> -> vector<8x8xf32>
    %91 = arith.truncf %90 : vector<8x8xf32> to vector<8x8xbf16>
    %c16 = arith.constant 16 : index
    %c0_41 = arith.constant 0 : index
    %92 = vector.load %arg11[%c16, %c0_41] : memref<32x32xbf16, #tpu.memory_space<vmem>>, vector<8x32xbf16>
    %cst_42 = arith.constant dense<0.000000e+00> : vector<8x32xf32>
    %93 = tpu.matmul %91, %92, %cst_42 {dimension_numbers = #tpu.dot_dimension_numbers<[1], [0], [0], [1], [0, 0, 1, 1], [], []>} : vector<8x8xbf16>, vector<8x32xbf16>, vector<8x32xf32> -> vector<8x32xf32>
    %94 = arith.addf %72, %93 : vector<8x32xf32>
    %95 = vector.extract_strided_slice %25 {offsets = [0, 24], sizes = [8, 8], strides = [1, 1]} : vector<8x32xbf16> to vector<8x8xbf16>
    %96 = vector.extract_strided_slice %26 {offsets = [0, 24], sizes = [8, 8], strides = [1, 1]} : vector<8x32xbf16> to vector<8x8xbf16>
    %97 = vector.extract_strided_slice %27 {offsets = [0, 24], sizes = [8, 8], strides = [1, 1]} : vector<8x32xbf16> to vector<8x8xbf16>
    %cst_43 = arith.constant dense<0.000000e+00> : vector<8x8xf32>
    %98 = tpu.matmul %95, %96, %cst_43 {dimension_numbers = #tpu.dot_dimension_numbers<[1], [1], [0], [0], [0, 0, 1, 0], [], []>} : vector<8x8xbf16>, vector<8x8xbf16>, vector<8x8xf32> -> vector<8x8xf32>
    %99 = vector.broadcast %5 : vector<1x8xf32> to vector<8x8xf32>
    %100 = arith.addf %98, %99 : vector<8x8xf32>
    %cst_44 = arith.constant dense<0xFF800000> : vector<8xf32>
    %101 = vector.multi_reduction <maximumf>, %100, %cst_44 [1] : vector<8x8xf32> to vector<8xf32>
    %102 = vector.shape_cast %101 : vector<8xf32> to vector<8x1xf32>
    %103 = vector.broadcast %102 : vector<8x1xf32> to vector<8x8xf32>
    %104 = arith.subf %100, %103 : vector<8x8xf32>
    %105 = math.exp %104 : vector<8x8xf32>
    %cst_45 = arith.constant dense<0.000000e+00> : vector<8xf32>
    %106 = vector.multi_reduction <add>, %105, %cst_45 [1] : vector<8x8xf32> to vector<8xf32>
    %107 = vector.shape_cast %106 : vector<8xf32> to vector<8x1xf32>
    %108 = tpu.reciprocal %107 {approx = true} : vector<8x1xf32> -> vector<8x1xf32>
    %109 = vector.broadcast %108 : vector<8x1xf32> to vector<8x8xf32>
    %110 = arith.mulf %105, %109 : vector<8x8xf32>
    %111 = arith.truncf %110 : vector<8x8xf32> to vector<8x8xbf16>
    %cst_46 = arith.constant dense<0.000000e+00> : vector<8x8xf32>
    %112 = tpu.matmul %111, %97, %cst_46 {dimension_numbers = #tpu.dot_dimension_numbers<[1], [0], [0], [1], [0, 0, 1, 1], [], []>} : vector<8x8xbf16>, vector<8x8xbf16>, vector<8x8xf32> -> vector<8x8xf32>
    %113 = arith.truncf %112 : vector<8x8xf32> to vector<8x8xbf16>
    %c24 = arith.constant 24 : index
    %c0_47 = arith.constant 0 : index
    %114 = vector.load %arg11[%c24, %c0_47] : memref<32x32xbf16, #tpu.memory_space<vmem>>, vector<8x32xbf16>
    %cst_48 = arith.constant dense<0.000000e+00> : vector<8x32xf32>
    %115 = tpu.matmul %113, %114, %cst_48 {dimension_numbers = #tpu.dot_dimension_numbers<[1], [0], [0], [1], [0, 0, 1, 1], [], []>} : vector<8x8xbf16>, vector<8x32xbf16>, vector<8x32xf32> -> vector<8x32xf32>
    %116 = arith.addf %94, %115 : vector<8x32xf32>
    %c0_49 = arith.constant 0 : index
    %c0_50 = arith.constant 0 : index
    %117 = vector.load %arg12[%c0_49, %c0_50] : memref<1x32xf32, #tpu.memory_space<vmem>>, vector<1x32xf32>
    %118 = vector.broadcast %117 : vector<1x32xf32> to vector<8x32xf32>
    %119 = arith.addf %116, %118 : vector<8x32xf32>
    %120 = arith.addf %119, %1 : vector<8x32xf32>
    %cst_51 = arith.constant dense<0.000000e+00> : vector<8xf32>
    %121 = vector.multi_reduction <add>, %120, %cst_51 [1] : vector<8x32xf32> to vector<8xf32>
    %122 = vector.shape_cast %121 : vector<8xf32> to vector<8x1xf32>
    %cst_52 = arith.constant 3.200000e+01 : f32
    %123 = vector.broadcast %cst_52 : f32 to vector<8x1xf32>
    %124 = arith.divf %122, %123 : vector<8x1xf32>
    %125 = vector.broadcast %124 : vector<8x1xf32> to vector<8x32xf32>
    %126 = arith.subf %120, %125 : vector<8x32xf32>
    %127 = arith.mulf %126, %126 : vector<8x32xf32>
    %cst_53 = arith.constant dense<0.000000e+00> : vector<8xf32>
    %128 = vector.multi_reduction <add>, %127, %cst_53 [1] : vector<8x32xf32> to vector<8xf32>
    %129 = vector.shape_cast %128 : vector<8xf32> to vector<8x1xf32>
    %cst_54 = arith.constant 3.200000e+01 : f32
    %130 = vector.broadcast %cst_54 : f32 to vector<8x1xf32>
    %131 = arith.divf %129, %130 : vector<8x1xf32>
    %132 = vector.broadcast %124 : vector<8x1xf32> to vector<8x32xf32>
    %133 = arith.subf %120, %132 : vector<8x32xf32>
    %cst_55 = arith.constant 9.99999996E-13 : f32
    %134 = vector.broadcast %cst_55 : f32 to vector<8x1xf32>
    %135 = arith.addf %131, %134 : vector<8x1xf32>
    %136 = math.rsqrt %135 : vector<8x1xf32>
    %137 = vector.broadcast %136 : vector<8x1xf32> to vector<8x32xf32>
    %138 = arith.mulf %133, %137 : vector<8x32xf32>
    %c0_56 = arith.constant 0 : index
    %c0_57 = arith.constant 0 : index
    %139 = vector.load %arg13[%c0_56, %c0_57] : memref<1x32xf32, #tpu.memory_space<vmem>>, vector<1x32xf32>
    %140 = vector.broadcast %139 : vector<1x32xf32> to vector<8x32xf32>
    %141 = arith.mulf %138, %140 : vector<8x32xf32>
    %c0_58 = arith.constant 0 : index
    %c0_59 = arith.constant 0 : index
    %142 = vector.load %arg14[%c0_58, %c0_59] : memref<1x32xf32, #tpu.memory_space<vmem>>, vector<1x32xf32>
    %143 = vector.broadcast %142 : vector<1x32xf32> to vector<8x32xf32>
    %144 = arith.addf %141, %143 : vector<8x32xf32>
    %145 = arith.truncf %144 : vector<8x32xf32> to vector<8x32xbf16>
    %c0_60 = arith.constant 0 : index
    %c0_61 = arith.constant 0 : index
    %146 = vector.load %arg15[%c0_60, %c0_61] : memref<32x64xbf16, #tpu.memory_space<vmem>>, vector<32x64xbf16>
    %cst_62 = arith.constant dense<0.000000e+00> : vector<8x64xf32>
    %147 = tpu.matmul %145, %146, %cst_62 {dimension_numbers = #tpu.dot_dimension_numbers<[1], [0], [0], [1], [0, 0, 1, 1], [], []>} : vector<8x32xbf16>, vector<32x64xbf16>, vector<8x64xf32> -> vector<8x64xf32>
    %c0_63 = arith.constant 0 : index
    %c0_64 = arith.constant 0 : index
    %148 = vector.load %arg16[%c0_63, %c0_64] : memref<1x64xf32, #tpu.memory_space<vmem>>, vector<1x64xf32>
    %149 = vector.broadcast %148 : vector<1x64xf32> to vector<8x64xf32>
    %150 = arith.addf %147, %149 : vector<8x64xf32>
    %cst_65 = arith.constant 0.000000e+00 : f32
    %151 = vector.broadcast %cst_65 : f32 to vector<8x64xf32>
    %152 = arith.maximumf %150, %151 : vector<8x64xf32>
    %153 = arith.truncf %152 : vector<8x64xf32> to vector<8x64xbf16>
    %c0_66 = arith.constant 0 : index
    %c0_67 = arith.constant 0 : index
    %154 = vector.load %arg17[%c0_66, %c0_67] : memref<64x32xbf16, #tpu.memory_space<vmem>>, vector<64x32xbf16>
    %cst_68 = arith.constant dense<0.000000e+00> : vector<8x32xf32>
    %155 = tpu.matmul %153, %154, %cst_68 {dimension_numbers = #tpu.dot_dimension_numbers<[1], [0], [0], [1], [0, 0, 1, 1], [], []>} : vector<8x64xbf16>, vector<64x32xbf16>, vector<8x32xf32> -> vector<8x32xf32>
    %c0_69 = arith.constant 0 : index
    %c0_70 = arith.constant 0 : index
    %156 = vector.load %arg18[%c0_69, %c0_70] : memref<1x32xf32, #tpu.memory_space<vmem>>, vector<1x32xf32>
    %157 = vector.broadcast %156 : vector<1x32xf32> to vector<8x32xf32>
    %158 = arith.addf %155, %157 : vector<8x32xf32>
    %159 = arith.addf %158, %144 : vector<8x32xf32>
    %cst_71 = arith.constant dense<0.000000e+00> : vector<8xf32>
    %160 = vector.multi_reduction <add>, %159, %cst_71 [1] : vector<8x32xf32> to vector<8xf32>
    %161 = vector.shape_cast %160 : vector<8xf32> to vector<8x1xf32>
    %cst_72 = arith.constant 3.200000e+01 : f32
    %162 = vector.broadcast %cst_72 : f32 to vector<8x1xf32>
    %163 = arith.divf %161, %162 : vector<8x1xf32>
    %164 = vector.broadcast %163 : vector<8x1xf32> to vector<8x32xf32>
    %165 = arith.subf %159, %164 : vector<8x32xf32>
    %166 = arith.mulf %165, %165 : vector<8x32xf32>
    %cst_73 = arith.constant dense<0.000000e+00> : vector<8xf32>
    %167 = vector.multi_reduction <add>, %166, %cst_73 [1] : vector<8x32xf32> to vector<8xf32>
    %168 = vector.shape_cast %167 : vector<8xf32> to vector<8x1xf32>
    %cst_74 = arith.constant 3.200000e+01 : f32
    %169 = vector.broadcast %cst_74 : f32 to vector<8x1xf32>
    %170 = arith.divf %168, %169 : vector<8x1xf32>
    %171 = vector.broadcast %163 : vector<8x1xf32> to vector<8x32xf32>
    %172 = arith.subf %159, %171 : vector<8x32xf32>
    %cst_75 = arith.constant 9.99999996E-13 : f32
    %173 = vector.broadcast %cst_75 : f32 to vector<8x1xf32>
    %174 = arith.addf %170, %173 : vector<8x1xf32>
    %175 = math.rsqrt %174 : vector<8x1xf32>
    %176 = vector.broadcast %175 : vector<8x1xf32> to vector<8x32xf32>
    %177 = arith.mulf %172, %176 : vector<8x32xf32>
    %c0_76 = arith.constant 0 : index
    %c0_77 = arith.constant 0 : index
    %178 = vector.load %arg19[%c0_76, %c0_77] : memref<1x32xf32, #tpu.memory_space<vmem>>, vector<1x32xf32>
    %179 = vector.broadcast %178 : vector<1x32xf32> to vector<8x32xf32>
    %180 = arith.mulf %177, %179 : vector<8x32xf32>
    %c0_78 = arith.constant 0 : index
    %c0_79 = arith.constant 0 : index
    %181 = vector.load %arg20[%c0_78, %c0_79] : memref<1x32xf32, #tpu.memory_space<vmem>>, vector<1x32xf32>
    %182 = vector.broadcast %181 : vector<1x32xf32> to vector<8x32xf32>
    %183 = arith.addf %180, %182 : vector<8x32xf32>
    %c0_80 = arith.constant 0 : index
    %c0_81 = arith.constant 0 : index
    %c0_82 = arith.constant 0 : index
    %184 = vector.load %arg21[%c0_80, %c0_81, %c0_82] : memref<1x8x32xf32, #tpu.memory_space<vmem>>, vector<1x8x32xf32>
    %185 = vector.shape_cast %184 : vector<1x8x32xf32> to vector<8x32xf32>
    %186 = vector.shape_cast %183 : vector<8x32xf32> to vector<1x8x32xf32>
    tpu.vector_store %arg21[%c0_80, %c0_81, %c0_82], %186 {strides = array<i32>} : memref<1x8x32xf32, #tpu.memory_space<vmem>>, vector<1x8x32xf32>,
    return
  }
  func.func @transform_0(%arg0: i32, %arg1: i32) -> (i32, i32, i32) {
    %c0_i32 = arith.constant 0 : i32
    %c0_i32_0 = arith.constant 0 : i32
    return %arg0, %arg1, %c0_i32 : i32, i32, i32
  }
  func.func @transform_1(%arg0: i32, %arg1: i32) -> (i32, i32, i32) {
    %c0_i32 = arith.constant 0 : i32
    %c0_i32_0 = arith.constant 0 : i32
    %c0_i32_1 = arith.constant 0 : i32
    return %arg0, %c0_i32, %c0_i32_0 : i32, i32, i32
  }
  func.func @transform_2(%arg0: i32, %arg1: i32) -> (i32, i32, i32) {
    %c0_i32 = arith.constant 0 : i32
    %c0_i32_0 = arith.constant 0 : i32
    %c0_i32_1 = arith.constant 0 : i32
    return %arg0, %c0_i32, %c0_i32_0 : i32, i32, i32
  }
  func.func @transform_3(%arg0: i32, %arg1: i32) -> (i32, i32) {
    %c0_i32 = arith.constant 0 : i32
    %c0_i32_0 = arith.constant 0 : i32
    %c0_i32_1 = arith.constant 0 : i32
    return %c0_i32, %c0_i32_0 : i32, i32
  }
  func.func @transform_4(%arg0: i32, %arg1: i32) -> (i32, i32) {
    %c0_i32 = arith.constant 0 : i32
    %c0_i32_0 = arith.constant 0 : i32
    %c0_i32_1 = arith.constant 0 : i32
    return %c0_i32, %c0_i32_0 : i32, i32
  }
  func.func @transform_5(%arg0: i32, %arg1: i32) -> (i32, i32) {
    %c0_i32 = arith.constant 0 : i32
    %c0_i32_0 = arith.constant 0 : i32
    %c0_i32_1 = arith.constant 0 : i32
    return %c0_i32, %c0_i32_0 : i32, i32
  }
  func.func @transform_6(%arg0: i32, %arg1: i32) -> (i32, i32) {
    %c0_i32 = arith.constant 0 : i32
    %c0_i32_0 = arith.constant 0 : i32
    %c0_i32_1 = arith.constant 0 : i32
    return %c0_i32, %c0_i32_0 : i32, i32
  }
  func.func @transform_7(%arg0: i32, %arg1: i32) -> (i32, i32) {
    %c0_i32 = arith.constant 0 : i32
    %c0_i32_0 = arith.constant 0 : i32
    %c0_i32_1 = arith.constant 0 : i32
    return %c0_i32, %c0_i32_0 : i32, i32
  }
  func.func @transform_8(%arg0: i32, %arg1: i32) -> (i32, i32) {
    %c0_i32 = arith.constant 0 : i32
    %c0_i32_0 = arith.constant 0 : i32
    %c0_i32_1 = arith.constant 0 : i32
    return %c0_i32, %c0_i32_0 : i32, i32
  }
  func.func @transform_9(%arg0: i32, %arg1: i32) -> (i32, i32) {
    %c0_i32 = arith.constant 0 : i32
    %c0_i32_0 = arith.constant 0 : i32
    %c0_i32_1 = arith.constant 0 : i32
    return %c0_i32, %c0_i32_0 : i32, i32
  }
  func.func @transform_10(%arg0: i32, %arg1: i32) -> (i32, i32) {
    %c0_i32 = arith.constant 0 : i32
    %c0_i32_0 = arith.constant 0 : i32
    %c0_i32_1 = arith.constant 0 : i32
    return %c0_i32, %c0_i32_0 : i32, i32
  }
  func.func @transform_11(%arg0: i32, %arg1: i32) -> (i32, i32) {
    %c0_i32 = arith.constant 0 : i32
    %c0_i32_0 = arith.constant 0 : i32
    %c0_i32_1 = arith.constant 0 : i32
    return %c0_i32, %c0_i32_0 : i32, i32
  }
  func.func @transform_12(%arg0: i32, %arg1: i32) -> (i32, i32) {
    %c0_i32 = arith.constant 0 : i32
    %c0_i32_0 = arith.constant 0 : i32
    %c0_i32_1 = arith.constant 0 : i32
    return %c0_i32, %c0_i32_0 : i32, i32
  }
  func.func @transform_13(%arg0: i32, %arg1: i32) -> (i32, i32) {
    %c0_i32 = arith.constant 0 : i32
    %c0_i32_0 = arith.constant 0 : i32
    %c0_i32_1 = arith.constant 0 : i32
    return %c0_i32, %c0_i32_0 : i32, i32
  }
  func.func @transform_14(%arg0: i32, %arg1: i32) -> (i32, i32) {
    %c0_i32 = arith.constant 0 : i32
    %c0_i32_0 = arith.constant 0 : i32
    %c0_i32_1 = arith.constant 0 : i32
    return %c0_i32, %c0_i32_0 : i32, i32
  }
  func.func @transform_15(%arg0: i32, %arg1: i32) -> (i32, i32) {
    %c0_i32 = arith.constant 0 : i32
    %c0_i32_0 = arith.constant 0 : i32
    %c0_i32_1 = arith.constant 0 : i32
    return %c0_i32, %c0_i32_0 : i32, i32
  }
  func.func @transform_16(%arg0: i32, %arg1: i32) -> (i32, i32) {
    %c0_i32 = arith.constant 0 : i32
    %c0_i32_0 = arith.constant 0 : i32
    %c0_i32_1 = arith.constant 0 : i32
    return %c0_i32, %c0_i32_0 : i32, i32
  }
  func.func @transform_17(%arg0: i32, %arg1: i32) -> (i32, i32) {
    %c0_i32 = arith.constant 0 : i32
    %c0_i32_0 = arith.constant 0 : i32
    %c0_i32_1 = arith.constant 0 : i32
    return %c0_i32, %c0_i32_0 : i32, i32
  }
  func.func @transform_18(%arg0: i32, %arg1: i32) -> (i32, i32) {
    %c0_i32 = arith.constant 0 : i32
    %c0_i32_0 = arith.constant 0 : i32
    %c0_i32_1 = arith.constant 0 : i32
    return %c0_i32, %c0_i32_0 : i32, i32
  }
  func.func @transform_19(%arg0: i32, %arg1: i32) -> (i32, i32, i32) {
    %c0_i32 = arith.constant 0 : i32
    %c0_i32_0 = arith.constant 0 : i32
    return %arg0, %arg1, %c0_i32 : i32, i32, i32
  }
}

</mosaic_0001>

<bundles_post_ra>
// kernel: tpu_custom_call.1
= control target key start
LH: loop header
LB: loop body
LE: loop exit
PB: predicated region body
PF: predicated region fallthrough
CT: control target
= control target key end

     0   :  { %s4348_s0 = inlined_call_operand.hbm [shape: f32[2,8,32], index: 0, kind: input, shape index: {}]   ;;  %s4349_s1 = inlined_call_operand.hbm [shape: f32[2,8,32], index: 1, kind: input, shape index: {}]   ;;  %s4350_s2 = inlined_call_operand.hbm [shape: f32[2,1,8], index: 2, kind: input, shape index: {}]   ;;  %s4351_s3 = inlined_call_operand.hbm [shape: bf16[32,32], index: 3, kind: input, shape index: {}]   ;;  %s4352_s4 = inlined_call_operand.hbm [shape: f32[1,32], index: 4, kind: input, shape index: {}]   ;;  %s4353_s5 = inlined_call_operand.hbm [shape: bf16[32,32], index: 5, kind: input, shape index: {}]   ;;  %s4354_s6 = inlined_call_operand.hbm [shape: f32[1,32], index: 6, kind: input, shape index: {}]   ;;  %s4355_s7 = inlined_call_operand.hbm [shape: bf16[32,32], index: 7, kind: input, shape index: {}]   ;;  %s4356_s8 = inlined_call_operand.hbm [shape: f32[1,32], index: 8, kind: input, shape index: {}]   ;;  %s4357_s9 = inlined_call_operand.hbm [shape: bf16[32,32], index: 9, kind: input, shape index: {}]   ;;  %s4358_s10 = inlined_call_operand.hbm [shape: f32[1,32], index: 10, kind: input, shape index: {}]   ;;  %s4359_s11 = inlined_call_operand.hbm [shape: f32[1,32], index: 11, kind: input, shape index: {}]   ;;  %s4360_s12 = inlined_call_operand.hbm [shape: f32[1,32], index: 12, kind: input, shape index: {}]   ;;  %s4361_s13 = inlined_call_operand.hbm [shape: bf16[32,64], index: 13, kind: input, shape index: {}]   ;;  %s4362_s14 = inlined_call_operand.hbm [shape: f32[1,64], index: 14, kind: input, shape index: {}]   ;;  %s4363_s15 = inlined_call_operand.hbm [shape: bf16[64,32], index: 15, kind: input, shape index: {}]   ;;  %s4364_s16 = inlined_call_operand.hbm [shape: f32[1,32], index: 16, kind: input, shape index: {}]   ;;  %s4365_s17 = inlined_call_operand.hbm [shape: f32[1,32], index: 17, kind: input, shape index: {}]   ;;  %s4366_s18 = inlined_call_operand.hbm [shape: f32[1,32], index: 18, kind: input, shape index: {}]   ;;  %s4367_s19 = inlined_call_operand.hbm [shape: f32[2,8,32], index: 19, kind: output, shape index: {}]  }
   0x1   :  { %4402 = sst [smem:[#allocation47_spill]] %s4348_s0 }
   0x2   :  { %4403 = sst [smem:[#allocation48_spill]] %s4349_s1 }
   0x3   :  { %4404 = sst [smem:[#allocation49_spill]] %s4350_s2 }
   0x4   :  { %4405 = sst [smem:[#allocation50_spill]] %s4351_s3 }
   0x5   :  { %4406 = sst [smem:[#allocation51_spill]] %s4352_s4 }
   0x6   :  { %4407 = sst [smem:[#allocation52_spill]] %s4353_s5 }
   0x7   :  { %4408 = sst [smem:[#allocation53_spill]] %s4354_s6 }
   0x8   :  { %4409 = sst [smem:[#allocation54_spill]] %s4355_s7 }
   0x9   :  { %4410 = sst [smem:[#allocation55_spill]] %s4356_s8 }
   0xa   :  { %4411 = sst [smem:[#allocation56_spill]] %s4357_s9 }
   0xb   :  { %4412 = sst [smem:[#allocation57_spill]] %s4358_s10 }
   0xc   :  { %4413 = sst [smem:[#allocation58_spill]] %s4359_s11 }
   0xd   :  { %4414 = sst [smem:[#allocation59_spill]] %s4360_s12 }
   0xe   :  { %4415 = sst [smem:[#allocation60_spill]] %s4361_s13 }
   0xf   :  { %4416 = sst [smem:[#allocation61_spill]] %s4362_s14 }
  0x10   :  { %4417 = sst [smem:[#allocation62_spill]] %s4363_s15 }
  0x11   :  { %4418 = sst [smem:[#allocation63_spill]] %s4364_s16 }
  0x12   :  { %4419 = sst [smem:[#allocation64_spill]] %s4365_s17 }
  0x13   :  { %4420 = sst [smem:[#allocation65_spill]] %s4366_s18 }
  0x14   :  { %4421 = sst [smem:[#allocation66_spill]] %s4367_s19 }
  0x15   :  { %24 = vsyncpa [#allocation3], 0 }
  0x16   :  { %26 = vsyncpa [#allocation3 + $0x1], 0 }
  0x17   :  { %27 = vsyncpa [#allocation6], 0 }
  0x18   :  { %29 = vsyncpa [#allocation6 + $0x1], 0 }
  0x19   :  { %30 = vsyncpa [#allocation9], 0 }
  0x1a   :  { %31 = vsyncpa [#allocation12], 0 }
  0x1b   :  { %32 = vsyncpa [#allocation15], 0 }
  0x1c   :  { %33 = vsyncpa [#allocation18], 0 }
  0x1d   :  { %34 = vsyncpa [#allocation21], 0 }
  0x1e   :  { %35 = vsyncpa [#allocation24], 0 }
  0x1f   :  { %36 = vsyncpa [#allocation27], 0 }
  0x20   :  { %37 = vsyncpa [#allocation30], 0 }
  0x21   :  { %38 = vsyncpa [#allocation4], 0 }
  0x22   :  { %40 = vsyncpa [#allocation4 + $0x1], 0  ;;  %s3572_s0 = smov 0   ;;  %s3574_s30 = smov 0  }
  0x23   :  { %s3576_s20 = smov 0   ;;  %s3578_s21 = smov 0  }
  0x24   :  { %s3580_s1 = smov 0   ;;  %s3582_s22 = smov 0  }
  0x25 LB: > { %4422 = sst [smem:[#allocation44_spill]] %s3435_s21  ;;  %s3603_s2 = sadd.s32 4294967295, %s3443_s22   ;;  %s3443_s22 = sphi %s3582_s22, %s46_s22   ;;  %s3439_s1 = sphi %s3580_s1, %s4491_s1   ;;  %s3435_s21 = sphi %s3578_s21, %s4490_s21   ;;  %s3431_s20 = sphi %s3576_s20, %s4489_s20   ;;  %s3427_s30 = sphi %s3574_s30, %s4488_s30   ;;  %s3423_s0 = sphi %s3572_s0, %s4487_s0  }
  0x26   : > { %p2271_p0 = scmp.ge.s32.totalorder %s3443_s22, 1  ;;  %p4381_p1 = scmp.eq.s32.totalorder %s3603_s2, 0 }
  0x27   : > { %p507_p2 = scmp.lt.s32.totalorder %s3443_s22, 3  ;;  %s3445_s24 = smov [#allocation8]  }
  0x28   : > { %s519_s25 = sshll.u32 %s3445_s24, 4  ;;  %s3446_s26 = smov [#allocation11]   ;;  %s3612_s25 = int_to_ptr.vmem [resolvable:$true] %s519_s25 }
  0x29   : > { %p3608_p3 = pnand %p2271_p0, %p507_p2  ;;  %s543_s27 = sshll.u32 %s3446_s26, 4  ;;  %s3623_s27 = int_to_ptr.vmem [resolvable:$true] %s543_s27 }
  0x2a   : > { %s3447_s28 = smov [#allocation14]   ;;  %s4426_s21 = sld [smem:[#allocation50_spill]] }
  0x2b   : > { %s4423_s23 = scalar_select %p3608_p3, 1, 0 }
  0x2c   : > { %p2587_p4 = pneg %p3608_p3  ;;  %s3625_s29 = sshll.u32 %s3447_s28, 4  ;;  %s568_s29 = int_to_ptr.vmem [resolvable:$true] %s3625_s29 }
  0x2d   : > { %4424 = sst [smem:[#allocation45_spill]] %s4423_s23 }
  0x2e   : > { %p3619_p6 = pnand %p2587_p4, %p4381_p1 }
  0x30   : > { %s4425_s3 = scalar_select %p3619_p6, 1, 0 }
  0x31   : > { %s4427_s18 = smov %s4426_s21  ;;  %s2787_s16 = scalar_lea.hbm %s4426_s21, 256 }
  0x32   : > { %p2788_p7 = scmp.ne.s32.totalorder %s4427_s18, %s2787_s16  ;;  %p3635_p8 = pneg %p3619_p6 }
  0x33   : > { %p2794_p11 = scmp.lt.u32.totalorder %s2787_s16, %s4427_s18 }
  0x34   : > { %s4428_s12 = scalar_select %p3635_p8, 1, 0 }
  0x35   : > { %p2790_p9 = pnand %p3635_p8, %p2788_p7 }
  0x37   : > { %p2791_p10 = pneg %p2790_p9 }
  0x39   : > { %p2796_p12 = pnand %p2794_p11, %p2791_p10 }
  0x3b   : > { %2799 = shalt.err (!%p2796_p12)
}
  0x3c   : > { %s2800_s14 = scalar_lea.vmem %s3612_s25, 256  ;;  %p2808_p4 = scmp.lt.s32.totalorder %s3612_s25, %s3612_s25 }
  0x3d   : > { %p2801_p13 = scmp.ne.s32.totalorder %s3612_s25, %s2800_s14  ;;  %p2809_p5 = scmp.lt.s32.totalorder %s2800_s14, %s2800_s14 }
  0x3f   : > { %p2803_p0 = pnand %p2801_p13, %p3635_p8  ;;  %p2810_p7 = por %p2809_p5, %p2808_p4 }
  0x41   : > { %p2804_p2 = pneg %p2803_p0 }
  0x43   : > { %p2811_p9 = pnand %p2810_p7, %p2804_p2 }
  0x45   : > { %2814 = shalt.err (!%p2811_p9)
}
  0x46   : > { %s3448_s19 = smov 64   ;;  %s3449_s16 = smov 4  }
  0x47   : > { %2590 = dma.hbm_to_vmem [thread:$0]  (!%p3619_p6), %s4427_s18, 256, %s3612_s25, [#allocation9], %s3448_s19, %s3448_s19, %s3449_s16  }
  0x48   : > { %s4429_s5 = sld [smem:[#allocation52_spill]] }
  0x4e   : > { %s2815_s28 = scalar_lea.hbm %s4429_s5, 256 }
  0x4f   : > { %p2816_p5 = scmp.ne.s32.totalorder %s4429_s5, %s2815_s28  ;;  %p2822_p12 = scmp.lt.u32.totalorder %s2815_s28, %s4429_s5 }
  0x51   : > { %p2818_p10 = pnand %p2816_p5, %p3635_p8 }
  0x53   : > { %p2819_p11 = pneg %p2818_p10 }
  0x55   : > { %p2824_p13 = pnand %p2822_p12, %p2819_p11 }
  0x57   : > { %2827 = shalt.err (!%p2824_p13)
}
  0x58   : > { %s2828_s25 = scalar_lea.vmem %s3623_s27, 256  ;;  %p2836_p7 = scmp.lt.s32.totalorder %s3623_s27, %s3623_s27 }
  0x59   : > { %p2829_p0 = scmp.ne.s32.totalorder %s3623_s27, %s2828_s25  ;;  %p2837_p9 = scmp.lt.s32.totalorder %s2828_s25, %s2828_s25 }
  0x5b   : > { %p2831_p2 = pnand %p2829_p0, %p3635_p8  ;;  %p2838_p5 = por %p2837_p9, %p2836_p7 }
  0x5d   : > { %p2832_p4 = pneg %p2831_p2 }
  0x5f   : > { %p2839_p10 = pnand %p2838_p5, %p2832_p4 }
  0x61   : > { %2842 = shalt.err (!%p2839_p10)
}
  0x62   : > { %2596 = dma.hbm_to_vmem [thread:$0]  (!%p3619_p6), %s4429_s5, 256, %s3623_s27, [#allocation12], %s3448_s19, %s3448_s19, %s3449_s16  }
  0x63   : > { %s4430_s7 = sld [smem:[#allocation54_spill]] }
  0x69   : > { %s2843_s23 = scalar_lea.hbm %s4430_s7, 256 }
  0x6a   : > { %p2844_p11 = scmp.ne.s32.totalorder %s4430_s7, %s2843_s23  ;;  %p2850_p0 = scmp.lt.u32.totalorder %s2843_s23, %s4430_s7 }
  0x6c   : > { %p2846_p12 = pnand %p2844_p11, %p3635_p8 }
  0x6e   : > { %p2847_p13 = pneg %p2846_p12 }
  0x70   : > { %p2852_p2 = pnand %p2850_p0, %p2847_p13 }
  0x72   : > { %2855 = shalt.err (!%p2852_p2)
}
  0x73   : > { %s2856_s25 = scalar_lea.vmem %s568_s29, 256  ;;  %p2864_p5 = scmp.lt.s32.totalorder %s568_s29, %s568_s29 }
  0x74   : > { %p2857_p4 = scmp.ne.s32.totalorder %s568_s29, %s2856_s25  ;;  %p2865_p10 = scmp.lt.s32.totalorder %s2856_s25, %s2856_s25 }
  0x76   : > { %p2859_p7 = pnand %p2857_p4, %p3635_p8  ;;  %p2866_p1 = por %p2865_p10, %p2864_p5 }
  0x78   : > { %p2860_p9 = pneg %p2859_p7 }
  0x7a   : > { %p2867_p3 = pnand %p2866_p1, %p2860_p9 }
  0x7c   : > { %2870 = shalt.err (!%p2867_p3)
}
  0x7d   : > { %2602 = dma.hbm_to_vmem [thread:$0]  (!%p3619_p6), %s4430_s7, 256, %s568_s29, [#allocation15], %s3448_s19, %s3448_s19, %s3449_s16  }
  0x7e   : > { %s3450_s8 = smov [#allocation17]   ;;  %s3451_s21 = smov [#allocation20]  }
  0x7f   : > { %s591_s10 = sshll.u32 %s3450_s8, 4  ;;  %s616_s23 = sshll.u32 %s3451_s21, 4  ;;  %s592_s10 = int_to_ptr.vmem [resolvable:$true] %s591_s10  ;;  %s617_s23 = int_to_ptr.vmem [resolvable:$true] %s616_s23 }
  0x80   : > { %s4431_s9 = sld [smem:[#allocation56_spill]] }
  0x86   : > { %s2871_s28 = scalar_lea.hbm %s4431_s9, 256 }
  0x87   : > { %p2872_p1 = scmp.ne.s32.totalorder %s4431_s9, %s2871_s28  ;;  %p2878_p12 = scmp.lt.u32.totalorder %s2871_s28, %s4431_s9 }
  0x89   : > { %p2874_p3 = pnand %p2872_p1, %p3635_p8 }
  0x8b   : > { %p2875_p11 = pneg %p2874_p3 }
  0x8d   : > { %p2880_p13 = pnand %p2878_p12, %p2875_p11 }
  0x8f   : > { %2883 = shalt.err (!%p2880_p13)
}
  0x90   : > { %s2884_s29 = scalar_lea.vmem %s592_s10, 256  ;;  %p2892_p7 = scmp.lt.s32.totalorder %s592_s10, %s592_s10 }
  0x91   : > { %p2885_p0 = scmp.ne.s32.totalorder %s592_s10, %s2884_s29  ;;  %p2893_p9 = scmp.lt.s32.totalorder %s2884_s29, %s2884_s29 }
  0x93   : > { %p2887_p2 = pnand %p2885_p0, %p3635_p8  ;;  %p2894_p5 = por %p2893_p9, %p2892_p7 }
  0x95   : > { %p2888_p4 = pneg %p2887_p2 }
  0x97   : > { %p2895_p10 = pnand %p2894_p5, %p2888_p4 }
  0x99   : > { %2898 = shalt.err (!%p2895_p10)
}
  0x9a   : > { %2608 = dma.hbm_to_vmem [thread:$0]  (!%p3619_p6), %s4431_s9, 256, %s592_s10, [#allocation18], %s3448_s19, %s3448_s19, %s3449_s16  }
  0x9b   : > { %s4432_s11 = sld [smem:[#allocation58_spill]] }
  0xa1   : > { %s2899_s24 = scalar_lea.hbm %s4432_s11, 16 }
  0xa2   : > { %p2900_p1 = scmp.ne.s32.totalorder %s4432_s11, %s2899_s24  ;;  %p2906_p12 = scmp.lt.u32.totalorder %s2899_s24, %s4432_s11 }
  0xa4   : > { %p2902_p3 = pnand %p2900_p1, %p3635_p8 }
  0xa6   : > { %p2903_p11 = pneg %p2902_p3 }
  0xa8   : > { %p2908_p13 = pnand %p2906_p12, %p2903_p11 }
  0xaa   : > { %2911 = shalt.err (!%p2908_p13)
}
  0xab   : > { %s2912_s27 = scalar_lea.vmem %s617_s23, 16  ;;  %s2919_s10 = scalar_lea.vmem %s617_s23, 32 }
  0xac   : > { %p2913_p0 = scmp.ne.s32.totalorder %s617_s23, %s2912_s27  ;;  %p2920_p7 = scmp.lt.s32.totalorder %s617_s23, %s617_s23 }
  0xad   : > { %p2921_p9 = scmp.lt.s32.totalorder %s2919_s10, %s2912_s27 }
  0xae   : > { %p2915_p2 = pnand %p2913_p0, %p3635_p8 }
  0xaf   : > { %p2922_p5 = por %p2921_p9, %p2920_p7 }
  0xb0   : > { %p2916_p4 = pneg %p2915_p2 }
  0xb2   : > { %p2923_p10 = pnand %p2922_p5, %p2916_p4 }
  0xb4   : > { %2926 = shalt.err (!%p2923_p10)
}
  0xb5   : > { %2614 = dma.hbm_to_vmem [thread:$0]  (!%p3619_p6), %s4432_s11, 16, %s617_s23, [#allocation21]  }
  0xb6   : > { %s3452_s6 = smov [#allocation23]   ;;  %s3453_s21 = smov [#allocation26]  }
  0xb7   : > { %s637_s8 = sshll.u32 %s3452_s6, 4  ;;  %s661_s24 = sshll.u32 %s3453_s21, 4  ;;  %s638_s8 = int_to_ptr.vmem [resolvable:$true] %s637_s8  ;;  %s662_s24 = int_to_ptr.vmem [resolvable:$true] %s661_s24 }
  0xb8   : > { %s4433_s13 = sld [smem:[#allocation60_spill]] }
  0xbe   : > { %s2927_s14 = scalar_lea.hbm %s4433_s13, 256 }
  0xbf   : > { %p2928_p1 = scmp.ne.s32.totalorder %s4433_s13, %s2927_s14  ;;  %p2934_p12 = scmp.lt.u32.totalorder %s2927_s14, %s4433_s13 }
  0xc1   : > { %p2930_p3 = pnand %p2928_p1, %p3635_p8 }
  0xc3   : > { %p2931_p11 = pneg %p2930_p3 }
  0xc5   : > { %p2936_p13 = pnand %p2934_p12, %p2931_p11 }
  0xc7   : > { %2939 = shalt.err (!%p2936_p13)
}
  0xc8   : > { %s2940_s23 = scalar_lea.vmem %s638_s8, 256  ;;  %p2948_p7 = scmp.lt.s32.totalorder %s638_s8, %s638_s8 }
  0xc9   : > { %p2941_p0 = scmp.ne.s32.totalorder %s638_s8, %s2940_s23  ;;  %p2949_p9 = scmp.lt.s32.totalorder %s2940_s23, %s2940_s23 }
  0xcb   : > { %p2943_p2 = pnand %p2941_p0, %p3635_p8  ;;  %p2950_p5 = por %p2949_p9, %p2948_p7 }
  0xcd   : > { %p2944_p4 = pneg %p2943_p2 }
  0xcf   : > { %p2951_p10 = pnand %p2950_p5, %p2944_p4 }
  0xd1   : > { %2954 = shalt.err (!%p2951_p10)
}
  0xd2   : > { %2620 = dma.hbm_to_vmem [thread:$0]  (!%p3619_p6), %s4433_s13, 256, %s638_s8, [#allocation24], %s3448_s19, %s3448_s19, %s3449_s16  }
  0xd3   : > { %s4434_s15 = sld [smem:[#allocation62_spill]] }
  0xd9   : > { %s2955_s28 = scalar_lea.hbm %s4434_s15, 512 }
  0xda   : > { %p2956_p1 = scmp.ne.s32.totalorder %s4434_s15, %s2955_s28  ;;  %p2962_p12 = scmp.lt.u32.totalorder %s2955_s28, %s4434_s15 }
  0xdc   : > { %p2958_p3 = pnand %p2956_p1, %p3635_p8 }
  0xde   : > { %p2959_p11 = pneg %p2958_p3 }
  0xe0   : > { %p2964_p13 = pnand %p2962_p12, %p2959_p11 }
  0xe2   : > { %2967 = shalt.err (!%p2964_p13)
}
  0xe3   : > { %s2968_s29 = scalar_lea.vmem %s662_s24, 512  ;;  %p2976_p7 = scmp.lt.s32.totalorder %s662_s24, %s662_s24 }
  0xe4   : > { %p2969_p0 = scmp.ne.s32.totalorder %s662_s24, %s2968_s29  ;;  %p2977_p9 = scmp.lt.s32.totalorder %s2968_s29, %s2968_s29 }
  0xe6   : > { %p2971_p2 = pnand %p2969_p0, %p3635_p8  ;;  %p2978_p5 = por %p2977_p9, %p2976_p7 }
  0xe8   : > { %p2972_p4 = pneg %p2971_p2 }
  0xea   : > { %p2979_p10 = pnand %p2978_p5, %p2972_p4 }
  0xec   : > { %2982 = shalt.err (!%p2979_p10)
}
  0xed   : > { %2626 = dma.hbm_to_vmem [thread:$0]  (!%p3619_p6), %s4434_s15, 512, %s662_s24, [#allocation27], %s3448_s19, %s3448_s19, %s3449_s16  }
  0xee   : > { %s3454_s5 = smov [#allocation29]   ;;  %s4435_s17 = sld [smem:[#allocation64_spill]] }
  0xef   : > { %s686_s6 = sshll.u32 %s3454_s5, 4  ;;  %s687_s6 = int_to_ptr.vmem [resolvable:$true] %s686_s6 }
  0xf4   : > { %s2983_s28 = scalar_lea.hbm %s4435_s17, 16 }
  0xf5   : > { %p2984_p1 = scmp.ne.s32.totalorder %s4435_s17, %s2983_s28  ;;  %p2990_p12 = scmp.lt.u32.totalorder %s2983_s28, %s4435_s17 }
  0xf7   : > { %p2986_p3 = pnand %p2984_p1, %p3635_p8 }
  0xf9   : > { %p2987_p11 = pneg %p2986_p3 }
  0xfb   : > { %p2992_p13 = pnand %p2990_p12, %p2987_p11 }
  0xfd   : > { %2995 = shalt.err (!%p2992_p13)
}
  0xfe   : > { %s2996_s19 = scalar_lea.vmem %s687_s6, 16  ;;  %s3003_s16 = scalar_lea.vmem %s687_s6, 32 }
  0xff   : > { %p2997_p0 = scmp.ne.s32.totalorder %s687_s6, %s2996_s19  ;;  %p3004_p7 = scmp.lt.s32.totalorder %s687_s6, %s687_s6 }
 0x100   : > { %p3005_p9 = scmp.lt.s32.totalorder %s3003_s16, %s2996_s19 }
 0x101   : > { %p2999_p2 = pnand %p2997_p0, %p3635_p8 }
 0x102   : > { %p3006_p5 = por %p3005_p9, %p3004_p7 }
 0x103   : > { %p3000_p4 = pneg %p2999_p2 }
 0x105   : > { %p3007_p10 = pnand %p3006_p5, %p3000_p4 }
 0x107   : > { %3010 = shalt.err (!%p3007_p10)
}
 0x108   : > { %2632 = dma.hbm_to_vmem [thread:$0]  (!%p3619_p6), %s4435_s17, 16, %s687_s6, [#allocation30]  }
 0x109   : > { %s2270_s8 = sadd.s32 4294967294, %s3443_s22   ;;  %s58_s23 = sadd.s32 1, %s3439_s1 }
 0x10a   : > { %p60_p1 = scmp.ge.s32.totalorder %s58_s23, 2  ;;  %s67_s5 = sadd.s32 1, %s3431_s20 }
 0x10b   : > { %p74_p3 = scmp.ne.s32.totalorder %s3431_s20, %s3427_s30  ;;  %p75_p11 = scmp.eq.s32.totalorder %s3443_s22, 0 }
 0x10c   : > { %s4493_s23 = smov (%p60_p1, %s58_s23), 0  ;;  %p80_p13 = scmp.ne.s32.totalorder %s3427_s30, %s3423_s0 }
 0x10d   : > { %4436 = sst [smem:[#allocation46_spill]] %s4493_s23  ;;  %p3814_p12 = por %p75_p11, %p74_p3 }
 0x10e   : > { %s62_s6 = ssub.s32 %s3439_s1, %s4493_s23  ;;  %p494_p0 = scmp.eq.s32.totalorder %s3603_s2, 1 }
 0x10f   : > { %p65_p2 = scmp.eq.s32.totalorder %s62_s6, 0  ;;  %p4438_p4 = scmp.eq.s32.totalorder %s3603_s2, 0 }
 0x110   : > { %p3829_p9 = por %p494_p0, %p74_p3  ;;  %p500_p5 = scmp.eq.s32.totalorder %s2270_s8, 1 }
 0x111   : > { %p3825_p7 = por %p4438_p4, %p80_p13  ;;  %p2666_p1 = scmp.lt.s32.totalorder %s3443_s22, 2 }
 0x112   : > { %s4440_s28 = scalar_select %p3829_p9, 1, 0 }
 0x113   : > { %s4439_s26 = scalar_select %p3825_p7, 1, 0 }
 0x114   : > { %s3834_s14 = scalar_select %p65_p2, %s3431_s20, %s67_s5  }
 0x115   : > { %p3836_p10 = por %p500_p5, %p80_p13  ;;  %s3842_s27 = sand.u32 1, %s3431_s20  }
 0x116   : > { %s4384_s10 = sshll.u32 %s3439_s1, 7  ;;  %s4383_s19 = sshll.u32 %s3842_s27, 3 }
 0x117   : > { %s4441_s25 = scalar_select %p3836_p10, 1, 0 }
 0x118   : > { %p3848_p11 = pnand %p2666_p1, %p3814_p12  ;;  %s727_s24 = sand.u32 1, %s3443_s22  }
 0x119   : > { %s4443_s5 = sld [smem:[#allocation48_spill]]  ;;  %s731_s7 = scalar_lea.vmem [#allocation5], %s4383_s19 }
 0x11a   : > { %s4442_s16 = scalar_select %p3848_p11, 1, 0 }
 0x11b   : > { %s738_s9 = sshll.u32 %s731_s7, 4  ;;  %s3864_s21 = scalar_lea.sflag [#allocation6], %s727_s24  ;;  %s3862_s9 = int_to_ptr.vmem [resolvable:$true] %s738_s9 }
 0x11c   : > { %p3870_p12 = pneg %p3848_p11 }
 0x11e   : > { %s4444_s13 = scalar_select %p3870_p12, 1, 0 }
 0x11f   : > { %s3858_s6 = scalar_lea.hbm %s4443_s5, %s4384_s10  ;;  %s3016_s19 = scalar_lea.hbm %s4443_s5, 256 }
 0x120   : > { %s3011_s11 = scalar_lea.hbm %s3858_s6, 128  ;;  %p3017_p2 = scmp.lt.u32.totalorder %s3858_s6, %s4443_s5 }
 0x121   : > { %p3012_p3 = scmp.ne.s32.totalorder %s3858_s6, %s3011_s11  ;;  %p3018_p4 = scmp.lt.u32.totalorder %s3016_s19, %s3011_s11 }
 0x122   : > { %p3020_p1 = scmp.lt.u32.totalorder %s3011_s11, %s3858_s6 }
 0x123   : > { %p3014_p13 = pnand %p3870_p12, %p3012_p3  ;;  %p3019_p5 = por %p3018_p4, %p3017_p2 }
 0x125   : > { %p3015_p0 = pneg %p3014_p13  ;;  %p3021_p10 = por %p3020_p1, %p3019_p5 }
 0x127   : > { %p3022_p9 = pnand %p3021_p10, %p3015_p0 }
 0x129   : > { %3025 = shalt.err (!%p3022_p9)
}
 0x12a   : > { %s3026_s24 = scalar_lea.vmem %s3862_s9, 128  ;;  %s3455_s29 = smov [#allocation5]  }
 0x12b   : > { %p3027_p3 = scmp.ne.s32.totalorder %s3862_s9, %s3026_s24  ;;  %s3031_s8 = sshll.u32 %s3455_s29, 4  ;;  %s3032_s8 = int_to_ptr.vmem [resolvable:$false] %s3031_s8 }
 0x12c   : > { %s3033_s10 = scalar_lea.vmem %s3032_s8, 256  ;;  %p3034_p6 = scmp.lt.s32.totalorder %s3862_s9, %s3032_s8 }
 0x12d   : > { %p3029_p13 = pnand %p3027_p3, %p3870_p12  ;;  %p3035_p8 = scmp.lt.s32.totalorder %s3033_s10, %s3026_s24 }
 0x12f   : > { %p3030_p7 = pneg %p3029_p13  ;;  %p3036_p2 = por %p3035_p8, %p3034_p6 }
 0x131   : > { %p3037_p4 = pnand %p3036_p2, %p3030_p7 }
 0x133   : > { %3040 = shalt.err (!%p3037_p4)
}
 0x134   : > { %2642 = dma.hbm_to_vmem [thread:$0]  (!%p3848_p11), %s3858_s6, 128, %s3862_s9, %s3864_s21  }
 0x135   : > { %s3456_s11 = smov [#allocation10]   ;;  %s3457_s7 = smov [#allocation13]  }
 0x136   : > { %s533_s19 = sshll.u32 %s3456_s11, 4  ;;  %s557_s5 = sshll.u32 %s3457_s7, 4  ;;  %s534_s19 = int_to_ptr.vmem [resolvable:$true] %s533_s19  ;;  %s558_s5 = int_to_ptr.vmem [resolvable:$true] %s557_s5 }
 0x137   : > { %s4445_s4 = sld [smem:[#allocation51_spill]]  ;;  %p4446_p8 = scmp.ne.s32.totalorder %s4428_s12, 0 }
 0x13d   : > { %s3041_s8 = scalar_lea.hbm %s4445_s4, 16 }
 0x13e   : > { %p3042_p6 = scmp.ne.s32.totalorder %s4445_s4, %s3041_s8  ;;  %p3048_p10 = scmp.lt.u32.totalorder %s3041_s8, %s4445_s4 }
 0x140   : > { %p3044_p7 = pnand %p3042_p6, %p4446_p8 }
 0x142   : > { %p3045_p9 = pneg %p3044_p7 }
 0x144   : > { %p3050_p0 = pnand %p3048_p10, %p3045_p9 }
 0x146   : > { %3053 = shalt.err (!%p3050_p0)
}
 0x147   : > { %s3054_s9 = scalar_lea.vmem %s534_s19, 16  ;;  %s3061_s15 = scalar_lea.vmem %s534_s19, 32 }
 0x148   : > { %p3055_p5 = scmp.ne.s32.totalorder %s534_s19, %s3054_s9  ;;  %p3062_p13 = scmp.lt.s32.totalorder %s534_s19, %s534_s19 }
 0x149   : > { %p3063_p2 = scmp.lt.s32.totalorder %s3061_s15, %s3054_s9 }
 0x14a   : > { %p3057_p1 = pnand %p3055_p5, %p4446_p8 }
 0x14b   : > { %p3064_p4 = por %p3063_p2, %p3062_p13 }
 0x14c   : > { %p3058_p3 = pneg %p3057_p1 }
 0x14e   : > { %p3065_p11 = pnand %p3064_p4, %p3058_p3 }
 0x150   : > { %3068 = shalt.err (!%p3065_p11)
}
 0x151   : > { %p4447_p6 = scmp.ne.s32.totalorder %s4425_s3, 0  ;;  %s4448_s7 = sld [smem:[#allocation53_spill]] }
 0x153   : > { %2593 = dma.hbm_to_vmem [thread:$0]  (!%p4447_p6), %s4445_s4, 16, %s534_s19, [#allocation9]  }
 0x157   : > { %s3069_s29 = scalar_lea.hbm %s4448_s7, 16 }
 0x158   : > { %p3070_p7 = scmp.ne.s32.totalorder %s4448_s7, %s3069_s29  ;;  %p3076_p11 = scmp.lt.u32.totalorder %s3069_s29, %s4448_s7 }
 0x15a   : > { %p3072_p9 = pnand %p3070_p7, %p4446_p8 }
 0x15c   : > { %p3073_p10 = pneg %p3072_p9 }
 0x15e   : > { %p3078_p0 = pnand %p3076_p11, %p3073_p10 }
 0x160   : > { %3081 = shalt.err (!%p3078_p0)
}
 0x161   : > { %s3082_s15 = scalar_lea.vmem %s558_s5, 16  ;;  %s3089_s19 = scalar_lea.vmem %s558_s5, 32 }
 0x162   : > { %p3083_p5 = scmp.ne.s32.totalorder %s558_s5, %s3082_s15  ;;  %p3090_p13 = scmp.lt.s32.totalorder %s558_s5, %s558_s5 }
 0x163   : > { %p3091_p2 = scmp.lt.s32.totalorder %s3089_s19, %s3082_s15 }
 0x164   : > { %p3085_p1 = pnand %p3083_p5, %p4446_p8 }
 0x165   : > { %p3092_p4 = por %p3091_p2, %p3090_p13 }
 0x166   : > { %p3086_p3 = pneg %p3085_p1 }
 0x168   : > { %p3093_p12 = pnand %p3092_p4, %p3086_p3 }
 0x16a   : > { %3096 = shalt.err (!%p3093_p12)
}
 0x16b   : > { %2599 = dma.hbm_to_vmem [thread:$0]  (!%p4447_p6), %s4448_s7, 16, %s558_s5, [#allocation12]  }
 0x16c   : > { %s3458_s17 = smov [#allocation16]   ;;  %s3459_s29 = smov [#allocation19]  }
 0x16d   : > { %s581_s18 = sshll.u32 %s3458_s17, 4  ;;  %s605_s8 = sshll.u32 %s3459_s29, 4  ;;  %s582_s18 = int_to_ptr.vmem [resolvable:$true] %s581_s18  ;;  %s606_s8 = int_to_ptr.vmem [resolvable:$true] %s605_s8 }
 0x16e   : > { %s4449_s9 = sld [smem:[#allocation55_spill]] }
 0x174   : > { %s3097_s4 = scalar_lea.hbm %s4449_s9, 16 }
 0x175   : > { %p3098_p12 = scmp.ne.s32.totalorder %s4449_s9, %s3097_s4  ;;  %p3104_p10 = scmp.lt.u32.totalorder %s3097_s4, %s4449_s9 }
 0x177   : > { %p3100_p7 = pnand %p3098_p12, %p4446_p8 }
 0x179   : > { %p3101_p9 = pneg %p3100_p7 }
 0x17b   : > { %p3106_p11 = pnand %p3104_p10, %p3101_p9 }
 0x17d   : > { %3109 = shalt.err (!%p3106_p11)
}
 0x17e   : > { %s3110_s5 = scalar_lea.vmem %s582_s18, 16  ;;  %s3117_s11 = scalar_lea.vmem %s582_s18, 32 }
 0x17f   : > { %p3111_p0 = scmp.ne.s32.totalorder %s582_s18, %s3110_s5  ;;  %p3118_p3 = scmp.lt.s32.totalorder %s582_s18, %s582_s18 }
 0x180   : > { %p3119_p13 = scmp.lt.s32.totalorder %s3117_s11, %s3110_s5 }
 0x181   : > { %p3113_p5 = pnand %p3111_p0, %p4446_p8 }
 0x182   : > { %p3120_p2 = por %p3119_p13, %p3118_p3 }
 0x183   : > { %p3114_p1 = pneg %p3113_p5 }
 0x185   : > { %p3121_p4 = pnand %p3120_p2, %p3114_p1 }
 0x187   : > { %3124 = shalt.err (!%p3121_p4)
}
 0x188   : > { %2605 = dma.hbm_to_vmem [thread:$0]  (!%p4447_p6), %s4449_s9, 16, %s582_s18, [#allocation15]  }
 0x189   : > { %s4450_s24 = sld [smem:[#allocation57_spill]] }
 0x18f   : > { %s3125_s10 = scalar_lea.hbm %s4450_s24, 16 }
 0x190   : > { %p3126_p12 = scmp.ne.s32.totalorder %s4450_s24, %s3125_s10  ;;  %p3132_p10 = scmp.lt.u32.totalorder %s3125_s10, %s4450_s24 }
 0x192   : > { %p3128_p7 = pnand %p3126_p12, %p4446_p8 }
 0x194   : > { %p3129_p9 = pneg %p3128_p7 }
 0x196   : > { %p3134_p11 = pnand %p3132_p10, %p3129_p9 }
 0x198   : > { %3137 = shalt.err (!%p3134_p11)
}
 0x199   : > { %s3138_s11 = scalar_lea.vmem %s606_s8, 16  ;;  %s3145_s18 = scalar_lea.vmem %s606_s8, 32 }
 0x19a   : > { %p3139_p0 = scmp.ne.s32.totalorder %s606_s8, %s3138_s11  ;;  %p3146_p3 = scmp.lt.s32.totalorder %s606_s8, %s606_s8 }
 0x19b   : > { %p3147_p13 = scmp.lt.s32.totalorder %s3145_s18, %s3138_s11 }
 0x19c   : > { %p3141_p5 = pnand %p3139_p0, %p4446_p8 }
 0x19d   : > { %p3148_p2 = por %p3147_p13, %p3146_p3 }
 0x19e   : > { %p3142_p1 = pneg %p3141_p5 }
 0x1a0   : > { %p3149_p4 = pnand %p3148_p2, %p3142_p1 }
 0x1a2   : > { %3152 = shalt.err (!%p3149_p4)
}
 0x1a3   : > { %2611 = dma.hbm_to_vmem [thread:$0]  (!%p4447_p6), %s4450_s24, 16, %s606_s8, [#allocation18]  }
 0x1a4   : > { %s3460_s4 = smov [#allocation22]   ;;  %s3461_s10 = smov [#allocation25]  }
 0x1a5   : > { %s627_s23 = sshll.u32 %s3460_s4, 4  ;;  %s651_s15 = sshll.u32 %s3461_s10, 4  ;;  %s628_s23 = int_to_ptr.vmem [resolvable:$true] %s627_s23  ;;  %s652_s15 = int_to_ptr.vmem [resolvable:$true] %s651_s15 }
 0x1a6   : > { %s4451_s5 = sld [smem:[#allocation59_spill]] }
 0x1ac   : > { %s3153_s7 = scalar_lea.hbm %s4451_s5, 16 }
 0x1ad   : > { %p3154_p12 = scmp.ne.s32.totalorder %s4451_s5, %s3153_s7  ;;  %p3160_p10 = scmp.lt.u32.totalorder %s3153_s7, %s4451_s5 }
 0x1af   : > { %p3156_p7 = pnand %p3154_p12, %p4446_p8 }
 0x1b1   : > { %p3157_p9 = pneg %p3156_p7 }
 0x1b3   : > { %p3162_p11 = pnand %p3160_p10, %p3157_p9 }
 0x1b5   : > { %3165 = shalt.err (!%p3162_p11)
}
 0x1b6   : > { %s3166_s8 = scalar_lea.vmem %s628_s23, 16  ;;  %s3173_s29 = scalar_lea.vmem %s628_s23, 32 }
 0x1b7   : > { %p3167_p0 = scmp.ne.s32.totalorder %s628_s23, %s3166_s8  ;;  %p3174_p3 = scmp.lt.s32.totalorder %s628_s23, %s628_s23 }
 0x1b8   : > { %p3175_p13 = scmp.lt.s32.totalorder %s3173_s29, %s3166_s8 }
 0x1b9   : > { %p3169_p5 = pnand %p3167_p0, %p4446_p8 }
 0x1ba   : > { %p3176_p2 = por %p3175_p13, %p3174_p3 }
 0x1bb   : > { %p3170_p1 = pneg %p3169_p5 }
 0x1bd   : > { %p3177_p4 = pnand %p3176_p2, %p3170_p1 }
 0x1bf   : > { %3180 = shalt.err (!%p3177_p4)
}
 0x1c0   : > { %2617 = dma.hbm_to_vmem [thread:$0]  (!%p4447_p6), %s4451_s5, 16, %s628_s23, [#allocation21]  }
 0x1c1   : > { %s4452_s19 = sld [smem:[#allocation61_spill]] }
 0x1c7   : > { %s3181_s6 = scalar_lea.hbm %s4452_s19, 16 }
 0x1c8   : > { %p3182_p12 = scmp.ne.s32.totalorder %s4452_s19, %s3181_s6  ;;  %p3188_p10 = scmp.lt.u32.totalorder %s3181_s6, %s4452_s19 }
 0x1ca   : > { %p3184_p7 = pnand %p3182_p12, %p4446_p8 }
 0x1cc   : > { %p3185_p9 = pneg %p3184_p7 }
 0x1ce   : > { %p3190_p11 = pnand %p3188_p10, %p3185_p9 }
 0x1d0   : > { %3193 = shalt.err (!%p3190_p11)
}
 0x1d1   : > { %s3194_s29 = scalar_lea.vmem %s652_s15, 16  ;;  %s3201_s23 = scalar_lea.vmem %s652_s15, 32 }
 0x1d2   : > { %p3195_p0 = scmp.ne.s32.totalorder %s652_s15, %s3194_s29  ;;  %p3202_p3 = scmp.lt.s32.totalorder %s652_s15, %s652_s15 }
 0x1d3   : > { %p3203_p13 = scmp.lt.s32.totalorder %s3201_s23, %s3194_s29 }
 0x1d4   : > { %p3197_p5 = pnand %p3195_p0, %p4446_p8 }
 0x1d5   : > { %p3204_p2 = por %p3203_p13, %p3202_p3 }
 0x1d6   : > { %p3198_p1 = pneg %p3197_p5 }
 0x1d8   : > { %p3205_p4 = pnand %p3204_p2, %p3198_p1 }
 0x1da   : > { %3208 = shalt.err (!%p3205_p4)
}
 0x1db   : > { %2623 = dma.hbm_to_vmem [thread:$0]  (!%p4447_p6), %s4452_s19, 16, %s652_s15, [#allocation24]  }
 0x1dc   : > { %s3462_s7 = smov [#allocation28]   ;;  %s3463_s6 = smov [#allocation31]  }
 0x1dd   : > { %s675_s9 = sshll.u32 %s3462_s7, 4  ;;  %s697_s11 = sshll.u32 %s3463_s6, 4  ;;  %s676_s9 = int_to_ptr.vmem [resolvable:$true] %s675_s9  ;;  %s698_s11 = int_to_ptr.vmem [resolvable:$true] %s697_s11 }
 0x1de   : > { %s4453_s8 = sld [smem:[#allocation63_spill]] }
 0x1e4   : > { %s3209_s5 = scalar_lea.hbm %s4453_s8, 16 }
 0x1e5   : > { %p3210_p12 = scmp.ne.s32.totalorder %s4453_s8, %s3209_s5  ;;  %p3216_p10 = scmp.lt.u32.totalorder %s3209_s5, %s4453_s8 }
 0x1e7   : > { %p3212_p7 = pnand %p3210_p12, %p4446_p8 }
 0x1e9   : > { %p3213_p9 = pneg %p3212_p7 }
 0x1eb   : > { %p3218_p11 = pnand %p3216_p10, %p3213_p9 }
 0x1ed   : > { %3221 = shalt.err (!%p3218_p11)
}
 0x1ee   : > { %s3222_s15 = scalar_lea.vmem %s676_s9, 16  ;;  %s3229_s10 = scalar_lea.vmem %s676_s9, 32 }
 0x1ef   : > { %p3223_p0 = scmp.ne.s32.totalorder %s676_s9, %s3222_s15  ;;  %p3230_p3 = scmp.lt.s32.totalorder %s676_s9, %s676_s9 }
 0x1f0   : > { %p3231_p13 = scmp.lt.s32.totalorder %s3229_s10, %s3222_s15 }
 0x1f1   : > { %p3225_p5 = pnand %p3223_p0, %p4446_p8 }
 0x1f2   : > { %p3232_p2 = por %p3231_p13, %p3230_p3 }
 0x1f3   : > { %p3226_p1 = pneg %p3225_p5 }
 0x1f5   : > { %p3233_p4 = pnand %p3232_p2, %p3226_p1 }
 0x1f7   : > { %3236 = shalt.err (!%p3233_p4)
}
 0x1f8   : > { %2629 = dma.hbm_to_vmem [thread:$0]  (!%p4447_p6), %s4453_s8, 16, %s676_s9, [#allocation27]  }
 0x1f9   : > { %s4454_s18 = sld [smem:[#allocation65_spill]] }
 0x1ff   : > { %s3237_s17 = scalar_lea.hbm %s4454_s18, 16 }
 0x200   : > { %p3238_p12 = scmp.ne.s32.totalorder %s4454_s18, %s3237_s17  ;;  %p3244_p10 = scmp.lt.u32.totalorder %s3237_s17, %s4454_s18 }
 0x202   : > { %p3240_p7 = pnand %p3238_p12, %p4446_p8 }
 0x204   : > { %p3241_p9 = pneg %p3240_p7 }
 0x206   : > { %p3246_p11 = pnand %p3244_p10, %p3241_p9 }
 0x208   : > { %3249 = shalt.err (!%p3246_p11)
}
 0x209   : > { %s3250_s10 = scalar_lea.vmem %s698_s11, 16  ;;  %s3257_s9 = scalar_lea.vmem %s698_s11, 32 }
 0x20a   : > { %p3251_p0 = scmp.ne.s32.totalorder %s698_s11, %s3250_s10  ;;  %p3258_p3 = scmp.lt.s32.totalorder %s698_s11, %s698_s11 }
 0x20b   : > { %p3259_p13 = scmp.lt.s32.totalorder %s3257_s9, %s3250_s10 }
 0x20c   : > { %p3253_p5 = pnand %p3251_p0, %p4446_p8 }
 0x20d   : > { %p3260_p2 = por %p3259_p13, %p3258_p3 }
 0x20e   : > { %p3254_p1 = pneg %p3253_p5 }
 0x210   : > { %p3261_p4 = pnand %p3260_p2, %p3254_p1 }
 0x212   : > { %3264 = shalt.err (!%p3261_p4)
}
 0x213   : > { %2635 = dma.hbm_to_vmem [thread:$0]  (!%p4447_p6), %s4454_s18, 16, %s698_s11, [#allocation30]  }
 0x214   : > { %s4455_s12 = sshll.u32 %s3439_s1, 7  ;;  %s4456_s17 = sld [smem:[#allocation47_spill]] }
 0x215   : > { %s4457_s23 = sshll.u32 %s3842_s27, 3  ;;  %s2293_s15 = sshll.u32 %s3439_s1, 4 }
 0x216   : > { %s712_s3 = scalar_lea.vmem [#allocation2], %s4457_s23  ;;  %s709_s10 = scalar_lea.sflag [#allocation3], %s3842_s27 }
 0x217   : > { %s720_s4 = sshll.u32 %s712_s3, 4  ;;  %p4458_p6 = scmp.ne.s32.totalorder %s4444_s13, 0  ;;  %s4047_s4 = int_to_ptr.vmem [resolvable:$true] %s720_s4 }
 0x21a   : > { %s4043_s29 = scalar_lea.hbm %s4456_s17, %s4455_s12  ;;  %s3270_s6 = scalar_lea.hbm %s4456_s17, 256 }
 0x21b   : > { %s3265_s9 = scalar_lea.hbm %s4043_s29, 128  ;;  %p3271_p9 = scmp.lt.u32.totalorder %s4043_s29, %s4456_s17 }
 0x21c   : > { %p3266_p8 = scmp.ne.s32.totalorder %s4043_s29, %s3265_s9  ;;  %p3272_p10 = scmp.lt.u32.totalorder %s3270_s6, %s3265_s9 }
 0x21d   : > { %p3274_p0 = scmp.lt.u32.totalorder %s3265_s9, %s4043_s29 }
 0x21e   : > { %p3268_p12 = pnand %p3266_p8, %p4458_p6  ;;  %p3273_p11 = por %p3272_p10, %p3271_p9 }
 0x220   : > { %p3269_p7 = pneg %p3268_p12  ;;  %p3275_p5 = por %p3274_p0, %p3273_p11 }
 0x222   : > { %p3276_p1 = pnand %p3275_p5, %p3269_p7 }
 0x224   : > { %3279 = shalt.err (!%p3276_p1)
}
 0x225   : > { %s3280_s5 = scalar_lea.vmem %s4047_s4, 128  ;;  %s3464_s23 = smov [#allocation2]  }
 0x226   : > { %p3281_p3 = scmp.ne.s32.totalorder %s4047_s4, %s3280_s5  ;;  %s3285_s3 = sshll.u32 %s3464_s23, 4  ;;  %s3286_s3 = int_to_ptr.vmem [resolvable:$false] %s3285_s3 }
 0x227   : > { %s3287_s11 = scalar_lea.vmem %s3286_s3, 256  ;;  %p3288_p4 = scmp.lt.s32.totalorder %s4047_s4, %s3286_s3 }
 0x228   : > { %p3283_p13 = pnand %p3281_p3, %p4458_p6  ;;  %p3289_p8 = scmp.lt.s32.totalorder %s3287_s11, %s3280_s5 }
 0x22a   : > { %p3284_p2 = pneg %p3283_p13  ;;  %p3290_p12 = por %p3289_p8, %p3288_p4 }
 0x22c   : > { %p3291_p9 = pnand %p3290_p12, %p3284_p2 }
 0x22e   : > { %3294 = shalt.err (!%p3291_p9)
}
 0x22f   : > { %p4459_p7 = scmp.ne.s32.totalorder %s4442_s16, 0  ;;  %s4460_s6 = sld [smem:[#allocation49_spill]] }
 0x230   : > { %s748_s24 = scalar_lea.vmem [#allocation7], %s3842_s27 }
 0x231   : > { %2639 = dma.hbm_to_vmem [thread:$0]  (!%p4459_p7), %s4043_s29, 128, %s4047_s4, %s709_s10  }
 0x232   : > { %s755_s5 = sshll.u32 %s748_s24, 4  ;;  %s756_s5 = int_to_ptr.vmem [resolvable:$true] %s755_s5 }
 0x235   : > { %s4077_s12 = scalar_lea.hbm %s4460_s6, %s2293_s15  ;;  %s3300_s4 = scalar_lea.hbm %s4460_s6, 32 }
 0x236   : > { %s3295_s23 = scalar_lea.hbm %s4077_s12, 16  ;;  %p3301_p5 = scmp.lt.u32.totalorder %s4077_s12, %s4460_s6 }
 0x237   : > { %p3296_p10 = scmp.ne.s32.totalorder %s4077_s12, %s3295_s23  ;;  %p3302_p1 = scmp.lt.u32.totalorder %s3300_s4, %s3295_s23 }
 0x238   : > { %p3304_p13 = scmp.lt.u32.totalorder %s3295_s23, %s4077_s12 }
 0x239   : > { %p3298_p11 = pnand %p3296_p10, %p4458_p6  ;;  %p3303_p3 = por %p3302_p1, %p3301_p5 }
 0x23b   : > { %p3299_p0 = pneg %p3298_p11  ;;  %p3305_p2 = por %p3304_p13, %p3303_p3 }
 0x23d   : > { %p3306_p4 = pnand %p3305_p2, %p3299_p0 }
 0x23f   : > { %3309 = shalt.err (!%p3306_p4)
}
 0x240   : > { %s3310_s27 = scalar_lea.vmem %s756_s5, 16  ;;  %s3465_s15 = smov [#allocation7]  }
 0x241   : > { %p3311_p8 = scmp.ne.s32.totalorder %s756_s5, %s3310_s27  ;;  %s3315_s9 = sshll.u32 %s3465_s15, 4  ;;  %s3316_s9 = int_to_ptr.vmem [resolvable:$false] %s3315_s9 }
 0x242   : > { %s3317_s7 = scalar_lea.vmem %s3316_s9, 32  ;;  %p3318_p10 = scmp.lt.s32.totalorder %s756_s5, %s3316_s9 }
 0x243   : > { %p3313_p12 = pnand %p3311_p8, %p4458_p6  ;;  %p3319_p11 = scmp.lt.s32.totalorder %s3317_s7, %s3310_s27 }
 0x245   : > { %p3314_p9 = pneg %p3313_p12  ;;  %p3320_p7 = por %p3319_p11, %p3318_p10 }
 0x247   : > { %p3321_p1 = pnand %p3320_p7, %p3314_p9 }
 0x249   : > { %3324 = shalt.err (!%p3321_p1)
}
 0x24a   : > { %p4461_p5 = scmp.ne.s32.totalorder %s4442_s16, 0  ;;  %s4462_s24 = sld [smem:[#allocation45_spill]] }
 0x24c   : > { %2645 = dma.hbm_to_vmem [thread:$0]  (!%p4461_p5), %s4077_s12, 16, %s756_s5, %s3864_s21  }
 0x250   : > { %p4463_p0 = scmp.ne.s32.totalorder %s4462_s24, 0 }
 0x251   : > { %s4101_s13 = sand.u32 (!%p4463_p0), 1, %s3427_s30   ;;  %p4464_p6 = scmp.ne.s32.totalorder (!%p4463_p0), %s4439_s26, 0 }
 0x252   : > { %764 = sbr.rel (%p4463_p0) target bundleno = 4315 (0x10db), region = 96  ;;  %s4104_s23 = sshll.u32 (!%p4463_p0), %s4101_s13, 3 }
 0x253   : > { %s767_s3 = scalar_lea.sflag (!%p4463_p0), [#allocation3], %s4101_s13  ;;  %s770_s29 = scalar_lea.vmem (!%p4463_p0), [#allocation2], %s4104_s23 }
 0x259   : > { %3378 = dma.done.wait (%p4464_p6), %s767_s3, 128  }
 0x25a   : > { %3380 = vsyncadd (%p4464_p6), %s767_s3, 4294967168  ;;  %s775_s16 = sand.u32 1, %s3603_s2   ;;  %s779_s12 = scalar_lea.vmem [#allocation5], %s4104_s23 }
 0x25b   : > { %s776_s21 = scalar_lea.sflag [#allocation6], %s775_s16 }
 0x25c   : > { %3382 = dma.done.wait (%p4464_p6), %s776_s21, 144  }
 0x25d   : > { %3384 = vsyncadd (%p4464_p6), %s776_s21, 4294967152  ;;  %s787_s5 = scalar_lea.vmem [#allocation7], %s4101_s13  ;;  %p4465_p7 = scmp.eq.s32.totalorder %s3603_s2, 0 }
 0x25f   : > { %3386 = dma.done.wait (%p4465_p7), [#allocation9], 272   ;;  %p4466_p3 = pmov %p4465_p7 }
 0x261   : > { %3388 = vsyncadd (%p4466_p3), [#allocation9], 4294967024  ;;  %p4467_p13 = pmov %p4466_p3 }
 0x262   : > { %p4468_p2 = pmov %p4466_p3 }
 0x263   : > { %3390 = dma.done.wait (%p4467_p13), [#allocation12], 272  }
 0x264   : > { %3392 = vsyncadd (%p4468_p2), [#allocation12], 4294967024  ;;  %p4469_p4 = pmov %p4468_p2 }
 0x265   : > { %p4470_p8 = pmov %p4468_p2 }
 0x266   : > { %3394 = dma.done.wait (%p4469_p4), [#allocation15], 272  }
 0x267   : > { %3396 = vsyncadd (%p4470_p8), [#allocation15], 4294967024  ;;  %p4471_p12 = pmov %p4468_p2 }
 0x268   : > { %p4472_p9 = pmov %p4468_p2 }
 0x269   : > { %3398 = dma.done.wait (%p4471_p12), [#allocation18], 272  }
 0x26a   : > { %3400 = vsyncadd (%p4472_p9), [#allocation18], 4294967024  ;;  %p4473_p10 = pmov %p4468_p2 }
 0x26b   : > { %p4474_p11 = pmov %p4468_p2 }
 0x26c   : > { %3402 = dma.done.wait (%p4473_p10), [#allocation21], 32  }
 0x26d   : > { %3404 = vsyncadd (%p4474_p11), [#allocation21], 4294967264  ;;  %p4475_p1 = pmov %p4468_p2 }
 0x26f   : > { %3406 = dma.done.wait (%p4475_p1), [#allocation24], 272   ;;  %p4476_p5 = pmov %p4475_p1 }
 0x270   : > { %p4477_p0 = pmov %p4475_p1 }
 0x271   : > { %3408 = vsyncadd (%p4476_p5), [#allocation24], 4294967024 }
 0x272   : > { %3410 = dma.done.wait (%p4477_p0), [#allocation27], 528   ;;  %p4478_p6 = pmov %p4477_p0 }
 0x273   : > { %p4479_p7 = pmov %p4477_p0 }
 0x274   : > { %3412 = vsyncadd (%p4478_p6), [#allocation27], 4294966768 }
 0x275   : > { %3414 = dma.done.wait (%p4479_p7), [#allocation30], 32   ;;  %p4480_p3 = pmov %p4477_p0 }
 0x276   : > { %v3466_v0 = vmov 0.0   ;;  %vm3467_vm0 = vmmov 0   ;;  %v2755_v1 = vld [vmem:[#allocation8] sm:$0xff]   ;;  %v2756_v2 = vld [vmem:[#allocation8 + $0x8] sm:$0xff]   ;;  %vm944_vm1 = vcmask 261120   ;;  %v2757_v4 = vld [vmem:[#allocation11] sm:$0xff]  }
 0x277   : > { %3416 = vsyncadd (%p4480_p3), [#allocation30], 4294967264  ;;  %2399 = vmatprep.subr.bf16.mxu1 %v3466_v0  ;;  %2403 = vmatprep.mubr.msk.bf16.mxu1 %vm3467_vm0, %v3466_v0  ;;  %v4159_v3 = vld [vmem:[%s770_s29] sm:$0xff]  ;;  %v917_v7 = vld [vmem:[%s779_s12] sm:$0xff]  ;;  %vm1127_vm2 = vcmask 64512   ;;  %s3468_s2 = smov 120  }
 0x278   : > { %2415 = vmatprep.subr.bf16.mxu0 %v3466_v0  ;;  %2419 = vmatprep.mubr.msk.bf16.mxu0 %vm3467_vm0, %v3466_v0  ;;  %v919_v5 = vpack.c.bf16 %v4159_v3, %v4159_v3  ;;  %v2758_v6 = vld [vmem:[#allocation11 + $0x8] sm:$0xff]   ;;  %v920_v8 = vpack.c.bf16 %v917_v7, %v917_v7  ;;  %v2314_v13 = vld [vmem:[#allocation10] ss:$0 sm:$0xff]  ;;  %v2318_v14 = vld [vmem:[#allocation13] ss:$0 sm:$0xff]  ;;  %s3469_s26 = smov 112  }
 0x279   : > { %2400 = vmatpush3.bf16.msra.mxu1 %v2755_v1  ;;  %v2759_v25 = vld [vmem:[#allocation14] sm:$0xff]   ;;  %v2760_v26 = vld [vmem:[#allocation14 + $0x8] sm:$0xff]   ;;  %v4202_v30 = vld [vmem:[%s787_s5] ss:$0 sm:$0xff]  ;;  %vm1189_vm3 = vcmask 1043456   ;;  %s3470_s4 = smov 104  }
 0x27a   : > { %2401 = vmatprep.subr.bf16.mxu1 %v3466_v0  ;;  %2416 = vmatpush3.bf16.msra.mxu0 %v2759_v25  ;;  %v2322_v52 = vld [vmem:[#allocation16] ss:$0 sm:$0xff]  ;;  %vm1907_vm4 = vcmask 523264   ;;  %s4481_s10 = sld [smem:[#allocation44_spill]]  ;;  %s914_s27 = scalar_lea.vmem [#allocation32], %s4104_s23 }
 0x27b   : > { %2417 = vmatprep.subr.bf16.mxu0 %v3466_v0  ;;  %s1997_s15 = sshll.u32 %s914_s27, 4  ;;  %s4482_s24 = sld [smem:[#allocation66_spill]]  ;;  %s4300_s15 = int_to_ptr.vmem [resolvable:$true] %s1997_s15 }
 0x27c   : > { %s1983_s29 = scalar_lea.sflag [#allocation4], %s4101_s13  ;;  %s3325_s16 = scalar_lea.vmem %s4300_s15, 128 }
 0x27d   : > { %2402 = vmatpush3.bf16.msra.mxu1 %v2756_v2  ;;  %v1349_v2 = vld [vmem:[#allocation17 + $0x4] sm:$0xf]  ;;  %p3326_p13 = scmp.ne.s32.totalorder %s4300_s15, %s3325_s16  ;;  %p4483_p2 = scmp.ne.s32.totalorder %s4440_s28, 0 }
 0x27e   : > { %2407 = vmatprep.subr.bf16.mxu1 %v3466_v0  ;;  %2418 = vmatpush3.bf16.msra.mxu0 %v2760_v26  ;;  %s3471_s23 = smov [#allocation32]  }
 0x27f   : > { %2429 = vmatprep.subr.bf16.mxu0 %v3466_v0  ;;  %p3327_p4 = pnand %p3326_p13, %p4483_p2  ;;  %s3329_s21 = sshll.u32 %s3471_s23, 4  ;;  %s3330_s21 = int_to_ptr.vmem [resolvable:$false] %s3329_s21 }
 0x280   : > { %2404 = vmatmul.mubr.msk.bf16.vlgmr.msra.gmra.mrb[0].mxu1 %vm944_vm1, %v919_v5  ;;  %s2355_s11 = sshll.u32 %s4481_s10, 7  ;;  %s3331_s12 = scalar_lea.vmem %s3330_s21, 256 }
 0x281   : > { %2408 = vmatpush3.bf16.msra.mxu1 %v2757_v4  ;;  %2411 = vmatprep.mubr.msk.bf16.mxu1 %vm3467_vm0, %v3466_v0  ;;  %v1354_v4 = vsel %vm1189_vm3, %v1349_v2, 0  ;;  %s4298_s3 = scalar_lea.hbm %s4482_s24, %s2355_s11  ;;  %p3328_p8 = pneg %p3327_p4 }
 0x282   : > { %2409 = vmatprep.subr.bf16.mxu1 %v3466_v0  ;;  %2420 = vmatmul.mubr.msk.bf16.vlgmr.msra.gmra.mrb[0].mxu0 %vm944_vm1, %v920_v8  ;;  %p3332_p12 = scmp.lt.s32.totalorder %s4300_s15, %s3330_s21  ;;  %p3333_p9 = scmp.lt.s32.totalorder %s3331_s12, %s3325_s16 }
 0x283   : > { %2431 = vmatprep.mubr.msk.bf16.mxu0 %vm3467_vm0, %v3466_v0 }
 0x284   : > { %p3334_p10 = por %p3333_p9, %p3332_p12 }
 0x285   : > { %2410 = vmatpush3.bf16.msra.mxu1 %v2758_v6 }
 0x286   : > { %2423 = vmatprep.subr.bf16.mxu1 %v3466_v0  ;;  %p3335_p11 = pnand %p3334_p10, %p3328_p8 }
 0x288   : > { %2412 = vmatmul.mubr.msk.bf16.vlgmr.msra.gmra.mrb[4].mxu1 %vm944_vm1, %v920_v8 }
 0x289   : > { %2425 = vmatprep.mubr.msk.bf16.mxu1 %vm3467_vm0, %v3466_v0 }
 0x353   : > { %v982_v9 = vpop.f32.mrb[0].mxu1 }
 0x354   : > { %v2405_v10 = vpop.f32.mrb[1].mxu1  ;;  %v983_v15 = vadd.f32 %v2314_v13, %v982_v9  ;;  %v1234_v9 = vld [vmem:[#allocation17] sm:$0xf] }
 0x355   : > { %v985_v11 = vpop.f32.mrb[2].mxu1  ;;  %v1112_v46 = vpop.f32.mrb[0].mxu0 }
 0x356   : > { %v2406_v12 = vpop.f32.mrb[3].mxu1  ;;  %v988_v20 = vmul.f32 0.35355338, %v983_v15  ;;  %v2421_v47 = vpop.f32.mrb[1].mxu0  ;;  %v1113_v53 = vadd.f32 %v2322_v52, %v1112_v46 }
 0x357   : > { %v1115_v48 = vpop.f32.mrb[2].mxu0  ;;  %v1400_v12 = vsel %vm1189_vm3, %v1234_v9, 0 }
 0x358   : > { %v4181_v24 = vpack.c.bf16 %v988_v20, %v988_v20  ;;  %v2422_v49 = vpop.f32.mrb[3].mxu0  ;;  %v4209_v54 = vpack.c.bf16 %v1113_v53, %v1113_v53 }
 0x35a   : > { %v1191_v55 = vsel %vm1189_vm3, %v4209_v54, 0 }
 0x35b   : > { %v1049_v16 = vpop.f32.mrb[4].mxu1  ;;  %2430 = vmatpush3.bf16.msra.mxu0 %v1191_v55 }
 0x35c   : > { %v1050_v17 = vadd.f32 %v2318_v14, %v1049_v16  ;;  %v2413_v18 = vpop.f32.mrb[5].mxu1  ;;  %2441 = vmatprep.subr.bf16.mxu0 %v3466_v0 }
 0x35d   : > { %v1052_v19 = vpop.f32.mrb[6].mxu1 }
 0x35e   : > { %v4175_v21 = vpack.c.bf16 %v1050_v17, %v1050_v17  ;;  %v2414_v22 = vpop.f32.mrb[7].mxu1 }
 0x360   : > { %1239 = vrot.lane.b32.xlu0 %v4175_v21, %s3468_s2  ;;  %v1132_v23 = vsel %vm1127_vm2, %v4175_v21, 0 }
 0x361   : > { %2424 = vmatpush3.bf16.xpose.msra.mxu1 %v1132_v23 }
 0x362   : > { %2435 = vmatprep.subr.bf16.mxu1 %v3466_v0 }
 0x364   : > { %1236 = vrot.lane.b32.xlu0 %v4181_v24, %s3468_s2 }
 0x368   : > { %2426 = vmatmul.mubr.msk.bf16.vlgmr.msra.gmra.mrb[8].mxu1 %vm1127_vm2, %v4181_v24 }
 0x369   : > { %2437 = vmatprep.mubr.msk.bf16.mxu1 %vm3467_vm0, %v3466_v0 }
 0x3d2   : > { %v1240_v27 = vpop.permute.xlu0 %1239 }
 0x3d3   : > { %v1245_v28 = vsel %vm1127_vm2, %v1240_v27, 0 }
 0x3d4   : > { %2436 = vmatpush3.bf16.xpose.msra.mxu1 %v1245_v28 }
 0x3d5   : > { %2447 = vmatprep.subr.bf16.mxu1 %v3466_v0 }
 0x3d6   : > { %v1237_v29 = vpop.permute.xlu0 %1236 }
 0x3db   : > { %2438 = vmatmul.mubr.msk.bf16.vlgmr.msra.gmra.mrb[12].mxu1 %vm1127_vm2, %v1237_v29 }
 0x3dc   : > { %2449 = vmatprep.mubr.msk.bf16.mxu1 %vm3467_vm0, %v3466_v0  ;;  %2448 = vmatpush3.bf16.msra.mxu1 %v1354_v4 }
 0x3dd   : > { %2459 = vmatprep.subr.bf16.mxu1 %v3466_v0 }
 0x43b   : > { %v1168_v31 = vpop.f32.mrb[8].mxu1 }
 0x43c   : > { %v1169_v32 = vadd.f32 %v4202_v30, %v1168_v31  ;;  %v2427_v33 = vpop.f32.mrb[9].mxu1 }
 0x43d   : > { %v1171_v34 = vpop.f32.mrb[10].mxu1 }
 0x43e   : > { %v2428_v35 = vpop.f32.mrb[11].mxu1  ;;  %v1174_v36 = vsel %vm1127_vm2, %v1169_v32, -inf }
 0x43f   : > { %1175 = vmax.xlane.f32.xlu1 %v1174_v36 }
 0x4ae   : > { %v1281_v37 = vpop.f32.mrb[12].mxu1 }
 0x4af   : > { %v1282_v38 = vadd.f32 %v4202_v30, %v1281_v37  ;;  %v2439_v39 = vpop.f32.mrb[13].mxu1 }
 0x4b0   : > { %v1284_v40 = vpop.f32.mrb[14].mxu1 }
 0x4b1   : > { %v2440_v41 = vpop.f32.mrb[15].mxu1  ;;  %v1287_v42 = vsel %vm1127_vm2, %v1282_v38, -inf }
 0x4b2   : > { %1288 = vmax.xlane.f32.xlu1 %v1287_v42 }
 0x4cc   : > { %v1176_v43 = vpop.xlane.xlu1 %1175 }
 0x4cd   : > { %v1177_v44 = vsub.f32 %v1169_v32, %v1176_v43 }
 0x4cf   : > { %v1178_v45 = vmul.f32 1.442695, %v1177_v44 }
 0x4d1   : > { %2767 = vpow2.f32 %v1178_v45 }
 0x4db   : > { %v2768_v50 = vpop.eup %2767 }
 0x4dc   : > { %v1180_v51 = vsel %vm1127_vm2, %v2768_v50, 0.0 }
 0x4dd   : > { %1181 = vadd.xlane.f32.xlu0 %v1180_v51 }
 0x4f3   : > { %1504 = vrot.lane.b32.xlu0 %v4209_v54, %s3469_s26 }
 0x53f   : > { %v1289_v56 = vpop.xlane.xlu1 %1288 }
 0x540   : > { %v1290_v57 = vsub.f32 %v1282_v38, %v1289_v56 }
 0x542   : > { %v1291_v58 = vmul.f32 1.442695, %v1290_v57 }
 0x544   : > { %2769 = vpow2.f32 %v1291_v58 }
 0x54e   : > { %v2770_v59 = vpop.eup %2769 }
 0x54f   : > { %v1293_v60 = vsel %vm1127_vm2, %v2770_v59, 0.0 }
 0x550   : > { %1294 = vadd.xlane.f32.xlu1 %v1293_v60 }
 0x561   : > { %1300 = vrot.lane.b32.xlu1 %v4209_v54, %s3468_s2 }
 0x565   : > { %1444 = vrot.lane.b32.xlu1 %v4175_v21, %s3469_s26 }
 0x569   : > { %1442 = vrot.lane.b32.xlu1 %v4181_v24, %s3469_s26 }
 0x56a   : > { %v1182_v61 = vpop.xlane.xlu0 %1181 }
 0x56b   : > { %2771 = vrcp.f32 %v1182_v61 }
 0x56e   : > { %v1505_v13 = vpop.permute.xlu0 %1504 }
 0x56f   : > { %v1510_v18 = vsel %vm1189_vm3, %v1505_v13, 0  ;;  %v1712_v13 = vld [vmem:[#allocation17 + $0xc] sm:$0xf] }
 0x575   : > { %v2772_v62 = vpop.eup %2771 }
 0x576   : > { %v1184_v63 = vmul.f32 %v2772_v62, %v2768_v50 }
 0x578   : > { %v1185_v1 = vpack.c.bf16 %v1184_v63, %v1184_v63 }
 0x57a   : > { %2432 = vmatmul.mubr.msk.bf16.vlgmr.msra.gmra.mrb[4].mxu0 %vm1127_vm2, %v1185_v1 }
 0x57b   : > { %2443 = vmatprep.mubr.msk.bf16.mxu0 %vm3467_vm0, %v3466_v0 }
 0x5dd   : > { %v1295_v5 = vpop.xlane.xlu1 %1294 }
 0x5de   : > { %2773 = vrcp.f32 %v1295_v5 }
 0x5e1   : > { %v1301_v6 = vpop.permute.xlu1 %1300 }
 0x5e2   : > { %v1306_v7 = vsel %vm1189_vm3, %v1301_v6, 0 }
 0x5e3   : > { %2442 = vmatpush3.bf16.msra.mxu0 %v1306_v7 }
 0x5e4   : > { %2453 = vmatprep.subr.bf16.mxu0 %v3466_v0 }
 0x5e5   : > { %v1445_v20 = vpop.permute.xlu1 %1444 }
 0x5e6   : > { %v1450_v27 = vsel %vm1127_vm2, %v1445_v20, 0 }
 0x5e8   : > { %v2774_v8 = vpop.eup %2773 }
 0x5e9   : > { %v1297_v10 = vmul.f32 %v2774_v8, %v2770_v59  ;;  %v1443_v29 = vpop.permute.xlu1 %1442 }
 0x5eb   : > { %v1298_v11 = vpack.c.bf16 %v1297_v10, %v1297_v10 }
 0x5ed   : > { %2444 = vmatmul.mubr.msk.bf16.vlgmr.msra.gmra.mrb[8].mxu0 %vm1127_vm2, %v1298_v11 }
 0x5ee   : > { %2454 = vmatpush3.bf16.msra.mxu0 %v1400_v12  ;;  %2455 = vmatprep.mubr.msk.bf16.mxu0 %vm3467_vm0, %v3466_v0 }
 0x5ef   : > { %2465 = vmatprep.subr.bf16.mxu0 %v3466_v0 }
 0x64d   : > { %v1227_v14 = vpop.f32.mrb[4].mxu0 }
 0x64e   : > { %v1233_v15 = vpack.c.bf16 %v1227_v14, %v1227_v14  ;;  %v2433_v16 = vpop.f32.mrb[5].mxu0 }
 0x64f   : > { %v1230_v17 = vpop.f32.mrb[6].mxu0 }
 0x650   : > { %v2434_v19 = vpop.f32.mrb[7].mxu0  ;;  %2456 = vmatmul.mubr.msk.bf16.vlgmr.msra.gmra.mrb[12].mxu0 %vm1127_vm2, %v1233_v15 }
 0x651   : > { %2466 = vmatpush3.bf16.msra.mxu0 %v1510_v18  ;;  %2467 = vmatprep.mubr.msk.bf16.mxu0 %vm3467_vm0, %v3466_v0 }
 0x652   : > { %2477 = vmatprep.subr.bf16.mxu0 %v3466_v0 }
 0x6c0   : > { %v1342_v22 = vpop.f32.mrb[8].mxu0 }
 0x6c1   : > { %v1348_v23 = vpack.c.bf16 %v1342_v22, %v1342_v22  ;;  %v2445_v25 = vpop.f32.mrb[9].mxu0 }
 0x6c2   : > { %v1345_v26 = vpop.f32.mrb[10].mxu0 }
 0x6c3   : > { %v2446_v28 = vpop.f32.mrb[11].mxu0  ;;  %2450 = vmatmul.mubr.msk.bf16.vlgmr.msra.gmra.mrb[16].mxu1 %vm1127_vm2, %v1348_v23 }
 0x6c4   : > { %2460 = vmatpush3.bf16.xpose.msra.mxu1 %v1450_v27  ;;  %2461 = vmatprep.mubr.msk.bf16.mxu1 %vm3467_vm0, %v3466_v0 }
 0x6c5   : > { %2471 = vmatprep.subr.bf16.mxu1 %v3466_v0 }
 0x6cb   : > { %2462 = vmatmul.mubr.msk.bf16.vlgmr.msra.gmra.mrb[20].mxu1 %vm1127_vm2, %v1443_v29 }
 0x6cc   : > { %2473 = vmatprep.mubr.msk.bf16.mxu1 %vm3467_vm0, %v3466_v0 }
 0x723   : > { %v1436_v31 = vpop.f32.mrb[12].mxu0 }
 0x724   : > { %v2457_v32 = vpop.f32.mrb[13].mxu0 }
 0x725   : > { %v1439_v33 = vpop.f32.mrb[14].mxu0 }
 0x726   : > { %v2458_v34 = vpop.f32.mrb[15].mxu0  ;;  %v2339_v33 = vld [vmem:[#allocation19] ss:$0 sm:$0xff] }
 0x796   : > { %v1390_v35 = vpop.f32.mrb[16].mxu1 }
 0x797   : > { %v4245_v36 = vadd.f32 %v1436_v31, %v1390_v35  ;;  %v2451_v37 = vpop.f32.mrb[17].mxu1 }
 0x798   : > { %v1393_v38 = vpop.f32.mrb[18].mxu1 }
 0x799   : > { %v2452_v39 = vpop.f32.mrb[19].mxu1 }
 0x79e   : > { %v1486_v40 = vpop.f32.mrb[20].mxu1 }
 0x79f   : > { %v1487_v41 = vadd.f32 %v4202_v30, %v1486_v40  ;;  %v2463_v42 = vpop.f32.mrb[21].mxu1 }
 0x7a0   : > { %v1489_v43 = vpop.f32.mrb[22].mxu1 }
 0x7a1   : > { %v2464_v44 = vpop.f32.mrb[23].mxu1  ;;  %v1492_v45 = vsel %vm1127_vm2, %v1487_v41, -inf }
 0x7a2   : > { %1493 = vmax.xlane.f32.xlu1 %v1492_v45 }
 0x82f   : > { %v1494_v46 = vpop.xlane.xlu1 %1493 }
 0x830   : > { %v1495_v47 = vsub.f32 %v1487_v41, %v1494_v46  ;;  %v2761_v46 = vld [vmem:[#allocation23] sm:$0xff]  }
 0x832   : > { %v1496_v48 = vmul.f32 1.442695, %v1495_v47  ;;  %v2762_v47 = vld [vmem:[#allocation23 + $0x8] sm:$0xff]  }
 0x834   : > { %2775 = vpow2.f32 %v1496_v48  ;;  %v2763_v48 = vld [vmem:[#allocation26] sm:$0xff]  }
 0x83e   : > { %v2776_v49 = vpop.eup %2775 }
 0x83f   : > { %v1498_v50 = vsel %vm1127_vm2, %v2776_v49, 0.0 }
 0x840   : > { %1499 = vadd.xlane.f32.xlu0 %v1498_v50 }
 0x856   : > { %1603 = vrot.lane.b32.xlu0 %v4175_v21, %s3470_s4 }
 0x85a   : > { %1601 = vrot.lane.b32.xlu0 %v4181_v24, %s3470_s4  ;;  %v1553_v24 = vld [vmem:[#allocation17 + $0x8] sm:$0xf] }
 0x85b   : > { %v1558_v58 = vsel %vm1189_vm3, %v1553_v24, 0 }
 0x85c   : > { %2472 = vmatpush3.bf16.msra.mxu1 %v1558_v58  ;;  %v2765_v58 = vld [vmem:[#allocation26 + $0x10] sm:$0xff]  }
 0x85d   : > { %2483 = vmatprep.subr.bf16.mxu1 %v3466_v0 }
 0x8cd   : > { %v1500_v51 = vpop.xlane.xlu0 %1499 }
 0x8ce   : > { %2777 = vrcp.f32 %v1500_v51 }
 0x8d1   : > { %v1604_v55 = vpop.permute.xlu0 %1603 }
 0x8d2   : > { %v1609_v57 = vsel %vm1127_vm2, %v1604_v55, 0 }
 0x8d5   : > { %v1602_v21 = vpop.permute.xlu0 %1601 }
 0x8d8   : > { %v2778_v52 = vpop.eup %2777 }
 0x8d9   : > { %v1502_v53 = vmul.f32 %v2778_v52, %v2776_v49  ;;  %v2764_v49 = vld [vmem:[#allocation26 + $0x8] sm:$0xff]  }
 0x8db   : > { %v1503_v56 = vpack.c.bf16 %v1502_v53, %v1502_v53  ;;  %v2340_v53 = vld [vmem:[#allocation20] ss:$0 sm:$0xff] }
 0x8dd   : > { %2468 = vmatmul.mubr.msk.bf16.vlgmr.msra.gmra.mrb[16].mxu0 %vm1127_vm2, %v1503_v56  ;;  %v2341_v56 = vld [vmem:[#allocation22] ss:$0 sm:$0xff] }
 0x8de   : > { %2478 = vmatpush3.bf16.xpose.msra.mxu0 %v1609_v57  ;;  %2479 = vmatprep.mubr.msk.bf16.mxu0 %vm3467_vm0, %v3466_v0 }
 0x8df   : > { %2489 = vmatprep.subr.bf16.mxu0 %v3466_v0 }
 0x8e5   : > { %2480 = vmatmul.mubr.msk.bf16.vlgmr.msra.gmra.mrb[20].mxu0 %vm1127_vm2, %v1602_v21 }
 0x8e6   : > { %2491 = vmatprep.mubr.msk.bf16.mxu0 %vm3467_vm0, %v3466_v0 }
 0x9b0   : > { %v1546_v59 = vpop.f32.mrb[16].mxu0 }
 0x9b1   : > { %v1552_v60 = vpack.c.bf16 %v1546_v59, %v1546_v59  ;;  %v2469_v61 = vpop.f32.mrb[17].mxu0  ;;  %v2766_v59 = vld [vmem:[#allocation26 + $0x18] sm:$0xff]  }
 0x9b2   : > { %v1549_v62 = vpop.f32.mrb[18].mxu0 }
 0x9b3   : > { %v2470_v63 = vpop.f32.mrb[19].mxu0  ;;  %2474 = vmatmul.mubr.msk.bf16.vlgmr.msra.gmra.mrb[24].mxu1 %vm1127_vm2, %v1552_v60  ;;  %v2342_v60 = vld [vmem:[#allocation25] ss:$0 sm:$0xff] }
 0x9b4   : > { %2485 = vmatprep.mubr.msk.bf16.mxu1 %vm3467_vm0, %v3466_v0 }
 0x9b8   : > { %v1645_v1 = vpop.f32.mrb[20].mxu0 }
 0x9b9   : > { %v1646_v2 = vadd.f32 %v4202_v30, %v1645_v1  ;;  %v2481_v4 = vpop.f32.mrb[21].mxu0  ;;  %v1717_v30 = vsel %vm1189_vm3, %v1712_v13, 0 }
 0x9ba   : > { %v1648_v5 = vpop.f32.mrb[22].mxu0  ;;  %2490 = vmatpush3.bf16.msra.mxu0 %v1717_v30 }
 0x9bb   : > { %v2482_v6 = vpop.f32.mrb[23].mxu0  ;;  %v1651_v7 = vsel %vm1127_vm2, %v1646_v2, -inf  ;;  %2503 = vmatprep.subr.bf16.mxu0 %v3466_v0 }
 0x9bc   : > { %1652 = vmax.xlane.f32.xlu0 %v1651_v7  ;;  %v2346_v6 = vld [vmem:[#allocation28] ss:$0 sm:$0xff] }
 0xa49   : > { %v1653_v8 = vpop.xlane.xlu0 %1652 }
 0xa4a   : > { %v1654_v9 = vsub.f32 %v1646_v2, %v1653_v8 }
 0xa4c   : > { %v1655_v10 = vmul.f32 1.442695, %v1654_v9 }
 0xa4e   : > { %2779 = vpow2.f32 %v1655_v10 }
 0xa58   : > { %v2780_v11 = vpop.eup %2779 }
 0xa59   : > { %v1657_v12 = vsel %vm1127_vm2, %v2780_v11, 0.0 }
 0xa5a   : > { %1658 = vadd.xlane.f32.xlu1 %v1657_v12 }
 0xa6b   : > { %1663 = vrot.lane.b32.xlu1 %v4209_v54, %s3470_s4 }
 0xa86   : > { %v1594_v14 = vpop.f32.mrb[24].mxu1 }
 0xa87   : > { %v1600_v15 = vadd.f32 %v1594_v14, %v4245_v36  ;;  %v2475_v16 = vpop.f32.mrb[25].mxu1 }
 0xa88   : > { %v1597_v17 = vpop.f32.mrb[26].mxu1 }
 0xa89   : > { %v2476_v18 = vpop.f32.mrb[27].mxu1 }
 0xae7   : > { %v1659_v19 = vpop.xlane.xlu1 %1658 }
 0xae8   : > { %2781 = vrcp.f32 %v1659_v19 }
 0xaeb   : > { %v1664_v20 = vpop.permute.xlu1 %1663 }
 0xaec   : > { %v1669_v22 = vsel %vm1189_vm3, %v1664_v20, 0 }
 0xaed   : > { %2484 = vmatpush3.bf16.msra.mxu1 %v1669_v22  ;;  %v2352_v22 = vld [vmem:[#allocation29] ss:$0 sm:$0xff] }
 0xaee   : > { %2495 = vmatprep.subr.bf16.mxu1 %v3466_v0 }
 0xaf2   : > { %v2782_v54 = vpop.eup %2781 }
 0xaf3   : > { %v1661_v23 = vmul.f32 %v2782_v54, %v2780_v11 }
 0xaf5   : > { %v1662_v25 = vpack.c.bf16 %v1661_v23, %v1661_v23  ;;  %v2353_v23 = vld [vmem:[#allocation31] ss:$0 sm:$0xff] }
 0xaf7   : > { %2486 = vmatmul.mubr.msk.bf16.vlgmr.msra.gmra.mrb[28].mxu1 %vm1127_vm2, %v1662_v25 }
 0xaf8   : > { %2499 = vmatprep.mubr.msk.bf16.mxu1 %vm3467_vm0, %v3466_v0  ;;  %2496 = vmatpush3.bf16.msra.mxu1 %v2761_v46 }
 0xaf9   : > { %2497 = vmatprep.subr.bf16.mxu1 %v3466_v0 }
 0xafc   : > { %2498 = vmatpush3.bf16.msra.mxu1 %v2762_v47 }
 0xbca   : > { %v1705_v26 = vpop.f32.mrb[28].mxu1 }
 0xbcb   : > { %v1711_v27 = vpack.c.bf16 %v1705_v26, %v1705_v26  ;;  %v2487_v28 = vpop.f32.mrb[29].mxu1 }
 0xbcc   : > { %v1708_v29 = vpop.f32.mrb[30].mxu1 }
 0xbcd   : > { %v2488_v31 = vpop.f32.mrb[31].mxu1  ;;  %2492 = vmatmul.mubr.msk.bf16.vlgmr.msra.gmra.mrb[24].mxu0 %vm1127_vm2, %v1711_v27 }
 0xbce   : > { %2511 = vmatprep.mubr.msk.bf16.mxu0 %vm3467_vm0, %v3466_v0  ;;  %2504 = vmatpush3.bf16.msra.mxu0 %v2763_v48 }
 0xbcf   : > { %2505 = vmatprep.subr.bf16.mxu0 %v3466_v0 }
 0xbd2   : > { %2506 = vmatpush3.bf16.msra.mxu0 %v2764_v49 }
 0xbd3   : > { %2507 = vmatprep.subr.bf16.mxu0 %v3466_v0 }
 0xbd6   : > { %2508 = vmatpush3.bf16.msra.mxu0 %v2765_v58 }
 0xbd7   : > { %2509 = vmatprep.subr.bf16.mxu0 %v3466_v0 }
 0xbda   : > { %2510 = vmatpush3.bf16.msra.mxu0 %v2766_v59 }
 0xca0   : > { %v1753_v32 = vpop.f32.mrb[24].mxu0 }
 0xca1   : > { %v1759_v34 = vadd.f32 %v1753_v32, %v1600_v15  ;;  %v2493_v35 = vpop.f32.mrb[25].mxu0 }
 0xca2   : > { %v1756_v36 = vpop.f32.mrb[26].mxu0 }
 0xca3   : > { %v1767_v37 = vadd.f32 %v2339_v33, %v1759_v34  ;;  %v2494_v38 = vpop.f32.mrb[27].mxu0 }
 0xca5   : > { %v1768_v39 = vadd.f32 %v1767_v37, %v4159_v3 }
 0xca7   : > { %v1769_v40 = vsel %vm944_vm1, %v1768_v39, 0.0 }
 0xca8   : > { %1770 = vadd.xlane.f32.xlu1 %v1769_v40 }
 0xd35   : > { %v1771_v41 = vpop.xlane.xlu1 %1770 }
 0xd36   : > { %v1773_v42 = vmul.f32 0.03125, %v1771_v41 }
 0xd38   : > { %v1774_v43 = vsub.f32 %v1768_v39, %v1773_v42 }
 0xd3a   : > { %v1775_v44 = vmul.f32 %v1774_v43, %v1774_v43 }
 0xd3c   : > { %v1776_v45 = vsel %vm944_vm1, %v1775_v44, 0.0 }
 0xd3d   : > { %1777 = vadd.xlane.f32.xlu0 %v1776_v45 }
 0xdca   : > { %v1778_v3 = vpop.xlane.xlu0 %1777 }
 0xdcb   : > { %v1779_v50 = vmul.f32 0.03125, %v1778_v3 }
 0xdcd   : > { %v1780_v51 = vadd.f32 1e-12, %v1779_v50 }
 0xdcf   : > { %2783 = vrsqrt.f32 %v1780_v51 }
 0xdd9   : > { %v2784_v52 = vpop.eup %2783 }
 0xdda   : > { %v1782_v55 = vmul.f32 %v2784_v52, %v1774_v43 }
 0xddc   : > { %v1790_v57 = vmul.f32 %v2340_v53, %v1782_v55 }
 0xdde   : > { %v1798_v21 = vadd.f32 %v2341_v56, %v1790_v57 }
 0xde0   : > { %v1799_v24 = vpack.c.bf16 %v1798_v21, %v1798_v21 }
 0xde2   : > { %2500 = vmatmul.mubr.msk.bf16.vlgmr.msra.gmra.mrb[32].mxu1 %vm944_vm1, %v1799_v24 }
 0xeb5   : > { %v1860_v61 = vpop.f32.mrb[32].mxu1 }
 0xeb6   : > { %v1861_v62 = vadd.f32 %v2342_v60, %v1860_v61  ;;  %v2501_v63 = vpop.f32.mrb[33].mxu1 }
 0xeb7   : > { %v1863_v1 = vpop.f32.mrb[34].mxu1 }
 0xeb8   : > { %v1866_v2 = vmax.f32 %v1861_v62, 0.0  ;;  %v2502_v4 = vpop.f32.mrb[35].mxu1 }
 0xeba   : > { %v1867_v5 = vpack.c.bf16 %v1866_v2, %v1866_v2 }
 0xebc   : > { %2512 = vmatmul.mubr.msk.bf16.vlgmr.msra.gmra.mrb[28].mxu0 %vm1907_vm4, %v1867_v5 }
 0xf8f   : > { %v1945_v7 = vpop.f32.mrb[28].mxu0 }
 0xf90   : > { %v1946_v8 = vadd.f32 %v2346_v6, %v1945_v7  ;;  %v2513_v9 = vpop.f32.mrb[29].mxu0 }
 0xf91   : > { %v1948_v10 = vpop.f32.mrb[30].mxu0 }
 0xf92   : > { %v2514_v11 = vpop.f32.mrb[31].mxu0  ;;  %v1951_v12 = vadd.f32 %v1946_v8, %v1798_v21 }
 0xf94   : > { %v1952_v0 = vsel %vm944_vm1, %v1951_v12, 0.0 }
 0xf95   : > { %1953 = vadd.xlane.f32.xlu0 %v1952_v0 }
0x1022   : > { %v1954_v13 = vpop.xlane.xlu0 %1953 }
0x1023   : > { %v1955_v30 = vmul.f32 0.03125, %v1954_v13 }
0x1025   : > { %v1956_v14 = vsub.f32 %v1951_v12, %v1955_v30 }
0x1027   : > { %v1957_v15 = vmul.f32 %v1956_v14, %v1956_v14 }
0x1029   : > { %v1958_v16 = vsel %vm944_vm1, %v1957_v15, 0.0 }
0x102a   : > { %1959 = vadd.xlane.f32.xlu0 %v1958_v16 }
0x10b7   : > { %v1960_v17 = vpop.xlane.xlu0 %1959 }
0x10b8   : > { %v1961_v18 = vmul.f32 0.03125, %v1960_v17 }
0x10ba   : > { %v1962_v19 = vadd.f32 1e-12, %v1961_v18 }
0x10bc   : > { %2785 = vrsqrt.f32 %v1962_v19 }
0x10c6   : > { %v2786_v20 = vpop.eup %2785 }
0x10c7   : > { %v1964_v54 = vmul.f32 %v2786_v20, %v1956_v14 }
0x10c9   : > { %v1972_v25 = vmul.f32 %v2352_v22, %v1964_v54 }
0x10cb   : > { %v1980_v26 = vadd.f32 %v2353_v23, %v1972_v25 }
0x10cd   : > { %1981 = vst.msk [vmem:[%s914_s27] sm:$0xff] %vm944_vm1, %v1980_v26 }
0x10ce   : > { %3338 = shalt.err (!%p3335_p11)
}
0x10cf   : > { %s3339_s13 = scalar_lea.hbm %s4298_s3, 128  ;;  %s3343_s26 = scalar_lea.hbm %s4482_s24, 256 }
0x10d0   : > { %p3340_p1 = scmp.ne.s32.totalorder %s4298_s3, %s3339_s13  ;;  %p3344_p6 = scmp.lt.u32.totalorder %s4298_s3, %s4482_s24 }
0x10d1   : > { %p3345_p7 = scmp.lt.u32.totalorder %s3343_s26, %s3339_s13  ;;  %p3347_p13 = scmp.lt.u32.totalorder %s3339_s13, %s4298_s3 }
0x10d2   : > { %p3341_p5 = pnand %p3340_p1, %p4483_p2 }
0x10d3   : > { %p3346_p3 = por %p3345_p7, %p3344_p6 }
0x10d4   : > { %p3342_p0 = pneg %p3341_p5 }
0x10d5   : > { %p3348_p4 = por %p3347_p13, %p3346_p3 }
0x10d7   : > { %p3349_p8 = pnand %p3348_p4, %p3342_p0 }
0x10d9   : > { %3352 = shalt.err (!%p3349_p8)
}
0x10da   : > { %2585 = dma.vmem_to_hbm [thread:$0]  (%p4483_p2), %s4300_s15, 128, %s4298_s3, %s1983_s29  }
0x10db PF: > { %s2009_s11 = sand.u32 1, %s3423_s0   ;;  %p4484_p12 = scmp.ne.s32.totalorder %s4441_s25, 0 }
0x10dc   : > { %p4485_p9 = scmp.ge.s32.totalorder %s3443_s22, 2  ;;  %s2010_s27 = scalar_lea.sflag [#allocation4], %s2009_s11 }
0x10de   : > { %p2647_p10 = pnand %p4485_p9, %p4484_p12 }
0x10e0   : > { %3418 = dma.done.wait (!%p2647_p10), %s2010_s27, 128  }
0x10e1   : > { %3420 = vsyncadd (!%p2647_p10), %s2010_s27, 4294967168  ;;  %s46_s22 = sadd.s32 1, %s3443_s22   ;;  %s4486_s28 = sld [smem:[#allocation46_spill]] }
0x10e2   : > { %p43_p11 = scmp.ge.s32.totalorder %s46_s22, 4   ;;  %s4487_s0 = smov %s3427_s30 }
0x10e3   : > { %s4488_s30 = smov %s3431_s20  ;;  %s4489_s20 = smov %s3834_s14 }
0x10e4   : > { %s4490_s21 = smov %s3439_s1  ;;  %45 = sbr.rel (!%p43_p11) target bundleno = 37 (0x25), region = 229 }
0x10e7   : > { %s4491_s1 = smov %s4486_s28 }
0x10eb   :  { %2015 = vsyncpa [#allocation3], 1 }
0x10ec   :  { %2017 = vsyncpa [#allocation3 + $0x1], 1 }
0x10ed   :  { %2018 = vsyncpa [#allocation6], 1 }
0x10ee   :  { %2020 = vsyncpa [#allocation6 + $0x1], 1 }
0x10ef   :  { %2021 = vsyncpa [#allocation9], 1 }
0x10f0   :  { %2022 = vsyncpa [#allocation12], 1 }
0x10f1   :  { %2023 = vsyncpa [#allocation15], 1 }
0x10f2   :  { %2024 = vsyncpa [#allocation18], 1 }
0x10f3   :  { %2025 = vsyncpa [#allocation21], 1 }
0x10f4   :  { %2026 = vsyncpa [#allocation24], 1 }
0x10f5   :  { %2027 = vsyncpa [#allocation27], 1 }
0x10f6   :  { %2028 = vsyncpa [#allocation30], 1 }
0x10f7   :  { %2029 = vsyncpa [#allocation4], 1 }
0x10f8   :  { %2031 = vsyncpa [#allocation4 + $0x1], 1 }

</bundles_post_ra>
